<compile_context>
chip_gen: v7x
topology: tpu7x:2x2x1
jax: 0.10.0
libtpu: 0.0.40
codegen_flags: <defaults>
</compile_context>

<pallas_src>
import functools
import math

import jax
import jax.numpy as jnp
from jax.experimental import pallas as pl
from jax.experimental.pallas import tpu as pltpu


def _ru(x, m):
    return ((x + m - 1) // m) * m


def _default_attn_dtype():
    # bf16 attention tanh on v6e / v7x (bf16 VPU/EUP doubles the EUP bottleneck
    # throughput and halves the ctx_proj resident); f32 on v5e and older.
    try:
        kind = jax.devices()[0].device_kind.lower()
    except Exception:
        return jnp.float32
    if any(tag in kind for tag in ("v6", "v7", "tpu7", "7x")):
        return jnp.bfloat16
    return jnp.float32


def _pointer_decoder_kernel(
    attn_dtype,
    # inputs
    inputs_ref, candidate_ref, mask0_ref, h0_ref, c0_ref, input0_ref,
    w_ih_ref, w_hh_ref, b_lstm_ref, w_ho_a_ref, w_ho_b_ref, b_ho_ref,
    w_ai_ref, b_ai_ref, w_ac_ref, b_ac_ref, v_ref,
    # outputs
    scores_ref, ptr_ref, hout_ref, cout_ref,
    # scratch
    x_scr, mask_scr, ctx_scr,
):
    bb, T, D = inputs_ref.shape
    H = h0_ref.shape[-1]
    t = pl.program_id(1)

    # ---- per-batch-block init (decode step 0) -------------------------------
    @pl.when(t == 0)
    def _init():
        hout_ref[...] = h0_ref[...]          # h state lives in the resident out block
        cout_ref[...] = c0_ref[...]          # c state lives in the resident out block
        x_scr[...] = jnp.broadcast_to(input0_ref[...], (bb, D))
        mask_scr[...] = mask0_ref[...]
        ptr_ref[...] = jnp.zeros((bb, T), jnp.int32)
        # 1x1-conv context projection of FFNAttention, hoisted out of the decode loop.
        ctx = (
            jnp.dot(candidate_ref[...].reshape(bb * T, H), w_ac_ref[...],
                    preferred_element_type=jnp.float32)
            + b_ac_ref[...]
        ).reshape(bb, T, H)
        ctx_scr[...] = ctx.astype(attn_dtype)

    # ---- one decode step -----------------------------------------------------
    h = hout_ref[...]
    c = cout_ref[...]
    x = x_scr[...]
    mask = mask_scr[...]

    # LSTM cell: two MXU matmuls (no per-step lane-axis concat of x0 and h).
    gates = (jnp.dot(x, w_ih_ref[...], preferred_element_type=jnp.float32)
             + jnp.dot(h, w_hh_ref[...], preferred_element_type=jnp.float32)
             + b_lstm_ref[...])
    i_g = jax.nn.sigmoid(gates[:, 0 * H:1 * H])
    f_g = jax.nn.sigmoid(gates[:, 1 * H:2 * H])
    g_g = jnp.tanh(gates[:, 2 * H:3 * H])
    o_g = jax.nn.sigmoid(gates[:, 3 * H:4 * H])
    c_t = f_g * c + i_g * g_g
    h_t = o_g * jnp.tanh(c_t)

    # FFN attention (Pointer-Net style); the (bb, T, H) tanh is the EUP hot spot,
    # so it runs in attn_dtype (bf16 on v6e/v7x, f32 on v5e).
    ctx = ctx_scr[...]
    inp_proj = (jnp.dot(h_t, w_ai_ref[...], preferred_element_type=jnp.float32)
                + b_ai_ref[...]).astype(attn_dtype)
    u = jnp.tanh(inp_proj[:, None, :] + ctx)                      # (bb, T, H)
    v = v_ref[...].astype(attn_dtype)[None, :, :]                 # (1, 1, H), no big broadcast
    att_raw = jnp.sum((u * v).astype(jnp.float32), axis=-1)       # (bb, T) f32
    neg_inf = jnp.float32(-jnp.inf)
    att = jnp.where(mask == 0.0, neg_inf, att_raw)                # raw masked scores

    # Pointer selection: first argmax of the masked raw scores (softmax monotone,
    # so this matches argmax of softmax(att) * mask).
    lane_idx = jax.lax.broadcasted_iota(jnp.int32, (bb, T), 1)
    row_max = jnp.max(att, axis=-1, keepdims=True)
    first_max = jnp.where(att == row_max, lane_idx, jnp.int32(T))
    sel = jnp.min(first_max, axis=-1, keepdims=True)              # (bb, 1) int32

    # NaN-safe softmax, used only for the attention context (exact normalization).
    m_safe = jnp.maximum(row_max, jnp.float32(-1e30))
    p = jnp.where(mask == 0.0, 0.0, jnp.exp(att_raw - m_safe))
    denom = jnp.sum(p, axis=-1, keepdims=True)
    denom = jnp.where(denom == 0.0, jnp.float32(1.0), denom)      # all-masked guard
    alpha = p / denom                                             # (bb, T)

    attn_ctx = jnp.einsum('bqt,bth->bqh',
                          alpha[:, None, :].astype(attn_dtype), ctx,
                          preferred_element_type=jnp.float32)[:, 0, :]      # (bb, H)
    attn_h = jnp.tanh(
        jnp.dot(attn_ctx, w_ho_a_ref[...], preferred_element_type=jnp.float32)
        + jnp.dot(h_t, w_ho_b_ref[...], preferred_element_type=jnp.float32)
        + b_ho_ref[...])

    # Past max_len the pointer falls back to the step index (matches reference).
    max_len = jnp.sum(mask0_ref[...], axis=-1, keepdims=True)     # (bb, 1)
    is_out = (max_len > t.astype(jnp.float32)).astype(jnp.int32)
    sel = sel * is_out + (1 - is_out) * t

    one_hot = (lane_idx == sel).astype(jnp.float32)               # (bb, T)
    new_mask = mask * (1.0 - one_hot)                             # repeat=False
    new_x = jnp.einsum('bqt,btd->bqd', one_hot[:, None, :], inputs_ref[...],
                       preferred_element_type=jnp.float32)[:, 0, :]         # (bb, D)

    # Outputs: lane-dense per-step score slab (pipelined writeback each t) and a
    # lane-dense pointer row accumulated in the resident (bb, T) output block.
    scores_ref[...] = att[None, :, :]
    ptr_ref[...] = jnp.where(lane_idx == t, sel, ptr_ref[...])

    # Recurrent state for the next decode step.
    hout_ref[...] = attn_h
    cout_ref[...] = c_t
    x_scr[...] = new_x
    mask_scr[...] = new_mask


def init_params(key, input_dim, hidden_dim):
    ks = jax.random.split(key, 12)

    def lin(kw, kb, fan_in, fan_out):
        bound = 1.0 / math.sqrt(fan_in)
        w = jax.random.uniform(kw, (fan_in, fan_out), jnp.float32, -bound, bound)
        b = jax.random.uniform(kb, (1, fan_out), jnp.float32, -bound, bound)
        return w, b

    p = {}
    p['input0'] = jax.random.uniform(ks[0], (1, input_dim), jnp.float32, -1.0, 1.0)
    p['w_ih'], p['b_ih'] = lin(ks[1], ks[2], input_dim, 4 * hidden_dim)
    p['w_hh'], p['b_hh'] = lin(ks[3], ks[4], hidden_dim, 4 * hidden_dim)
    p['w_ho'], p['b_ho'] = lin(ks[5], ks[6], 2 * hidden_dim, hidden_dim)
    p['w_ai'], p['b_ai'] = lin(ks[7], ks[8], hidden_dim, hidden_dim)    # att.input_linear
    p['w_ac'], p['b_ac'] = lin(ks[9], ks[10], hidden_dim, hidden_dim)   # att.context_linear (1x1 conv)
    p['v'] = jax.random.uniform(ks[11], (1, hidden_dim), jnp.float32, -1.0, 1.0)
    return p


def pointer_decoder_forward(params, inputs, h0, c0, candidate,
                            candidate_mask=None, batch_block=128, attn_dtype=None):
    B, T, D = inputs.shape
    H = h0.shape[-1]
    if attn_dtype is None:
        attn_dtype = _default_attn_dtype()
    if candidate_mask is None:
        mask0 = jnp.ones((B, T), jnp.float32)
    else:
        mask0 = candidate_mask.astype(jnp.float32)

    # ---- batch blocking: big sublane-dense blocks, sharded over "parallel" axis.
    bb = _ru(max(8, int(batch_block)), 8)
    bb = min(bb, _ru(B, 8))              # don't pad tiny batches up to a huge block
    B_pad = _ru(B, bb)
    if B >= 16 and B_pad // bb < 2:      # v7x megacore: want >= 2 batch blocks
        bb = _ru((B + 1) // 2, 8)
        B_pad = _ru(B, bb)
    pad = B_pad - B
    if pad:
        inputs = jnp.pad(inputs, ((0, pad), (0, 0), (0, 0)))
        candidate = jnp.pad(candidate, ((0, pad), (0, 0), (0, 0)))
        # Padded rows get a full mask so their math stays finite; results discarded.
        mask0 = jnp.pad(mask0, ((0, pad), (0, 0)), constant_values=1.0)
        h0 = jnp.pad(h0, ((0, pad), (0, 0)))
        c0 = jnp.pad(c0, ((0, pad), (0, 0)))

    # ---- host-side weight packing ----
    b_lstm = params['b_ih'] + params['b_hh']          # (1, 4H), biases pre-summed
    w_ho_a = params['w_ho'][:H, :]                     # multiplies attn_ctx
    w_ho_b = params['w_ho'][H:, :]                     # multiplies h_t
    # TODO(synk): for production H that is not a multiple of 128, zero-pad H / 4H
    # lanes host-side (per LSTM gate) for dense vregs; skipped here because padding
    # H=32 -> 128 would 4x the EUP-bound tanh work.

    args = (inputs, candidate, mask0, h0, c0, params['input0'],
            params['w_ih'], params['w_hh'], b_lstm,
            w_ho_a, w_ho_b, params['b_ho'],
            params['w_ai'], params['b_ai'], params['w_ac'], params['b_ac'],
            params['v'])

    nb = B_pad // bb
    grid = (nb, T)                                    # (parallel batch, arbitrary step)
    bmap3 = lambda b, t: (b, 0, 0)
    bmap2 = lambda b, t: (b, 0)
    cmap2 = lambda b, t: (0, 0)

    in_specs = [
        pl.BlockSpec((bb, T, D), bmap3),              # inputs (resident across t)
        pl.BlockSpec((bb, T, H), bmap3),              # candidate (resident across t)
        pl.BlockSpec((bb, T), bmap2),                 # initial mask
        pl.BlockSpec((bb, H), bmap2),                 # h0
        pl.BlockSpec((bb, H), bmap2),                 # c0
        pl.BlockSpec((1, D), cmap2),                  # input0
        pl.BlockSpec((D, 4 * H), cmap2),              # w_ih
        pl.BlockSpec((H, 4 * H), cmap2),              # w_hh
        pl.BlockSpec((1, 4 * H), cmap2),              # b_ih + b_hh
        pl.BlockSpec((H, H), cmap2),                  # hidden_out (attn half)
        pl.BlockSpec((H, H), cmap2),                  # hidden_out (h_t half)
        pl.BlockSpec((1, H), cmap2),                  # b_ho
        pl.BlockSpec((H, H), cmap2),                  # att.input_linear W
        pl.BlockSpec((1, H), cmap2),                  # att.input_linear b
        pl.BlockSpec((H, H), cmap2),                  # att.context_linear W (1x1 conv)
        pl.BlockSpec((1, H), cmap2),                  # att.context_linear b
        pl.BlockSpec((1, H), cmap2),                  # V
    ]
    out_specs = (
        pl.BlockSpec((1, bb, T), lambda b, t: (t, b, 0)),  # per-step raw scores slab
        pl.BlockSpec((bb, T), bmap2),                      # pointers (lane-dense, resident)
        pl.BlockSpec((bb, H), bmap2),                      # final h (also the h state)
        pl.BlockSpec((bb, H), bmap2),                      # final c (also the c state)
    )
    out_shape = (
        jax.ShapeDtypeStruct((T, B_pad, T), jnp.float32),
        jax.ShapeDtypeStruct((B_pad, T), jnp.int32),
        jax.ShapeDtypeStruct((B_pad, H), jnp.float32),
        jax.ShapeDtypeStruct((B_pad, H), jnp.float32),
    )
    scratch_shapes = [
        pltpu.VMEM((bb, D), jnp.float32),             # pointer-selected input embedding
        pltpu.VMEM((bb, T), jnp.float32),             # running mask
        pltpu.VMEM((bb, T, H), attn_dtype),           # hoisted 1x1-conv context projection
    ]

    # Conservative VMEM budget; raise the scoped limit only when needed.
    attn_itemsize = jnp.dtype(attn_dtype).itemsize
    est_vmem = (
        2 * 4 * bb * (T * D + T * H + T + 2 * H)              # double-buffered batch inputs
        + 2 * 4 * (D * 4 * H + 8 * H * H + 16 * H + D)        # weights / biases (approx)
        + 2 * (4 * bb * T + 4 * bb * T + 2 * 4 * bb * H)      # double-buffered outputs
        + 4 * bb * D + 4 * bb * T + attn_itemsize * bb * T * H  # scratch
    )
    cp_kwargs = dict(dimension_semantics=("parallel", "arbitrary"))
    if est_vmem > (16 << 20):
        # v5e's default scoped limit is only 16 MiB; v7x has 64 MiB physical VMEM,
        # so there lower batch_block rather than pushing the limit much higher.
        cp_kwargs["vmem_limit_bytes"] = int(min(est_vmem * 3 // 2 + (4 << 20), 96 << 20))

    scores_tbt, ptr_bt, h_out, c_out = pl.pallas_call(
        functools.partial(_pointer_decoder_kernel, attn_dtype),
        grid=grid,
        in_specs=in_specs,
        out_specs=out_specs,
        out_shape=out_shape,
        scratch_shapes=scratch_shapes,
        compiler_params=pltpu.CompilerParams(**cp_kwargs),
    )(*args)

    # Same as torch: cat over steps then permute(1, 0, 2).
    # TODO(synk): for very large B*T^2, fuse this transpose into the consumer instead
    # of paying an extra HBM pass over the largest output.
    scores = jnp.transpose(scores_tbt, (1, 0, 2))[:B]   # (B, T, T)
    pointers = ptr_bt[:B]                               # (B, T) int32, already lane-dense
    return (scores, pointers), (h_out[:B], c_out[:B])


if __name__ == "__main__":
    B, T, D, H = 2, 8, 16, 32
    key = jax.random.PRNGKey(0)
    k_in, k_cand, k_h, k_c, k_param = jax.random.split(key, 5)

    inputs = jax.random.normal(k_in, (B, T, D), jnp.float32)
    candidate = jax.random.normal(k_cand, (B, T, H), jnp.float32)
    h0 = jax.random.normal(k_h, (B, H), jnp.float32)
    c0 = jax.random.normal(k_c, (B, H), jnp.float32)
    params = init_params(k_param, D, H)

    # Full mask: with repeat=False the decoder must emit a permutation of 0..T-1.
    (scores, pointers), (h_fin, c_fin) = pointer_decoder_forward(
        params, inputs, h0, c0, candidate, candidate_mask=None)
    jax.block_until_ready((scores, pointers, h_fin, c_fin))

    assert scores.shape == (B, T, T) and scores.dtype == jnp.float32
    assert pointers.shape == (B, T) and pointers.dtype == jnp.int32
    assert h_fin.shape == (B, H) and c_fin.shape == (B, H)
    assert bool(jnp.all(jnp.isfinite(h_fin))) and bool(jnp.all(jnp.isfinite(c_fin)))
    assert bool(jnp.all((pointers >= 0) & (pointers < T)))
    assert all(len(set(map(int, row))) == T for row in pointers)

    # Partial mask: after max_len steps the pointer falls back to the step index,
    # and the guarded softmax keeps the recurrent state finite.
    mask = jnp.array([[1, 1, 1, 1, 1, 0, 0, 0],
                      [1, 1, 1, 1, 1, 1, 1, 1]], jnp.float32)
    (scores2, ptr2), (h2, c2) = pointer_decoder_forward(
        params, inputs, h0, c0, candidate, candidate_mask=mask)
    jax.block_until_ready((scores2, ptr2, h2, c2))
    assert bool(jnp.all(jnp.isfinite(h2))) and bool(jnp.all(jnp.isfinite(c2)))
    assert bool(jnp.all(ptr2[0, 5:] == jnp.arange(5, 8)))
    assert len(set(map(int, ptr2[0, :5]))) == 5 and bool(jnp.all(ptr2[0, :5] < 5))
    assert len(set(map(int, ptr2[1]))) == T

    print("KERNEL_OK")
</pallas_src>

<mosaic_0001>
module attributes {stable_mosaic.version = 11 : i64} {
  func.func @_pointer_decoder_kernel(%arg0: i32, %arg1: i32, %arg2: memref<8x8x16xf32, #tpu.memory_space<vmem>>, %arg3: memref<8x8x32xf32, #tpu.memory_space<vmem>>, %arg4: memref<8x8xf32, #tpu.memory_space<vmem>>, %arg5: memref<8x32xf32, #tpu.memory_space<vmem>>, %arg6: memref<8x32xf32, #tpu.memory_space<vmem>>, %arg7: memref<1x16xf32, #tpu.memory_space<vmem>>, %arg8: memref<16x128xf32, #tpu.memory_space<vmem>>, %arg9: memref<32x128xf32, #tpu.memory_space<vmem>>, %arg10: memref<1x128xf32, #tpu.memory_space<vmem>>, %arg11: memref<32x32xf32, #tpu.memory_space<vmem>>, %arg12: memref<32x32xf32, #tpu.memory_space<vmem>>, %arg13: memref<1x32xf32, #tpu.memory_space<vmem>>, %arg14: memref<32x32xf32, #tpu.memory_space<vmem>>, %arg15: memref<1x32xf32, #tpu.memory_space<vmem>>, %arg16: memref<32x32xf32, #tpu.memory_space<vmem>>, %arg17: memref<1x32xf32, #tpu.memory_space<vmem>>, %arg18: memref<1x32xf32, #tpu.memory_space<vmem>>, %arg19: memref<1x8x8xf32, #tpu.memory_space<vmem>>, %arg20: memref<8x8xi32, #tpu.memory_space<vmem>>, %arg21: memref<8x32xf32, #tpu.memory_space<vmem>>, %arg22: memref<8x32xf32, #tpu.memory_space<vmem>>, %arg23: memref<8x16xf32, #tpu.memory_space<vmem>>, %arg24: memref<8x8xf32, #tpu.memory_space<vmem>>, %arg25: memref<8x8x32xf32, #tpu.memory_space<vmem>>) attributes {dimension_semantics = [#tpu.dimension_semantics<parallel>, #tpu.dimension_semantics<arbitrary>], iteration_bounds = array<i64: 1, 8>, scalar_prefetch = 0 : i64, scratch_operands = 3 : i64, tpu.core_type = #tpu.core_type<tc>, window_params = [{transform_indices = @transform_0, window_bounds = array<i64: 8, 8, 16>}, {transform_indices = @transform_1, window_bounds = array<i64: 8, 8, 32>}, {transform_indices = @transform_2, window_bounds = array<i64: 8, 8>}, {transform_indices = @transform_3, window_bounds = array<i64: 8, 32>}, {transform_indices = @transform_4, window_bounds = array<i64: 8, 32>}, {pipeline_mode = #tpu.pipeline_mode<synchronous>, transform_indices = @transform_5, window_bounds = array<i64: 1, 16>}, {pipeline_mode = #tpu.pipeline_mode<synchronous>, transform_indices = @transform_6, window_bounds = array<i64: 16, 128>}, {pipeline_mode = #tpu.pipeline_mode<synchronous>, transform_indices = @transform_7, window_bounds = array<i64: 32, 128>}, {pipeline_mode = #tpu.pipeline_mode<synchronous>, transform_indices = @transform_8, window_bounds = array<i64: 1, 128>}, {pipeline_mode = #tpu.pipeline_mode<synchronous>, transform_indices = @transform_9, window_bounds = array<i64: 32, 32>}, {pipeline_mode = #tpu.pipeline_mode<synchronous>, transform_indices = @transform_10, window_bounds = array<i64: 32, 32>}, {pipeline_mode = #tpu.pipeline_mode<synchronous>, transform_indices = @transform_11, window_bounds = array<i64: 1, 32>}, {pipeline_mode = #tpu.pipeline_mode<synchronous>, transform_indices = @transform_12, window_bounds = array<i64: 32, 32>}, {pipeline_mode = #tpu.pipeline_mode<synchronous>, transform_indices = @transform_13, window_bounds = array<i64: 1, 32>}, {pipeline_mode = #tpu.pipeline_mode<synchronous>, transform_indices = @transform_14, window_bounds = array<i64: 32, 32>}, {pipeline_mode = #tpu.pipeline_mode<synchronous>, transform_indices = @transform_15, window_bounds = array<i64: 1, 32>}, {pipeline_mode = #tpu.pipeline_mode<synchronous>, transform_indices = @transform_16, window_bounds = array<i64: 1, 32>}, {transform_indices = @transform_17, window_bounds = array<i64: 1, 8, 8>}, {transform_indices = @transform_18, window_bounds = array<i64: 8, 8>}, {transform_indices = @transform_19, window_bounds = array<i64: 8, 32>}, {transform_indices = @transform_20, window_bounds = array<i64: 8, 32>}]} {
    %c0_i32 = arith.constant 0 : i32
    %0 = arith.cmpi eq, %arg1, %c0_i32 : i32
    %1 = arith.extui %0 : i1 to i32
    %c0_i32_0 = arith.constant 0 : i32
    %2 = arith.cmpi ne, %1, %c0_i32_0 : i32
    scf.if %2 {
      %c0_71 = arith.constant 0 : index
      %c0_72 = arith.constant 0 : index
      %134 = vector.load %arg5[%c0_71, %c0_72] : memref<8x32xf32, #tpu.memory_space<vmem>>, vector<8x32xf32>
      %c0_73 = arith.constant 0 : index
      %c0_74 = arith.constant 0 : index
      %135 = vector.load %arg21[%c0_73, %c0_74] : memref<8x32xf32, #tpu.memory_space<vmem>>, vector<8x32xf32>
      tpu.vector_store %arg21[%c0_73, %c0_74], %134 {strides = array<i32>} : memref<8x32xf32, #tpu.memory_space<vmem>>, vector<8x32xf32>,
      %c0_75 = arith.constant 0 : index
      %c0_76 = arith.constant 0 : index
      %136 = vector.load %arg6[%c0_75, %c0_76] : memref<8x32xf32, #tpu.memory_space<vmem>>, vector<8x32xf32>
      %c0_77 = arith.constant 0 : index
      %c0_78 = arith.constant 0 : index
      %137 = vector.load %arg22[%c0_77, %c0_78] : memref<8x32xf32, #tpu.memory_space<vmem>>, vector<8x32xf32>
      tpu.vector_store %arg22[%c0_77, %c0_78], %136 {strides = array<i32>} : memref<8x32xf32, #tpu.memory_space<vmem>>, vector<8x32xf32>,
      %c0_79 = arith.constant 0 : index
      %c0_80 = arith.constant 0 : index
      %138 = vector.load %arg7[%c0_79, %c0_80] : memref<1x16xf32, #tpu.memory_space<vmem>>, vector<1x16xf32>
      %139 = vector.shape_cast %138 : vector<1x16xf32> to vector<1x16xf32>
      %140 = vector.broadcast %139 : vector<1x16xf32> to vector<8x16xf32>
      %c0_81 = arith.constant 0 : index
      %c0_82 = arith.constant 0 : index
      %141 = vector.load %arg23[%c0_81, %c0_82] : memref<8x16xf32, #tpu.memory_space<vmem>>, vector<8x16xf32>
      tpu.vector_store %arg23[%c0_81, %c0_82], %140 {strides = array<i32>} : memref<8x16xf32, #tpu.memory_space<vmem>>, vector<8x16xf32>,
      %c0_83 = arith.constant 0 : index
      %c0_84 = arith.constant 0 : index
      %142 = vector.load %arg4[%c0_83, %c0_84] : memref<8x8xf32, #tpu.memory_space<vmem>>, vector<8x8xf32>
      %c0_85 = arith.constant 0 : index
      %c0_86 = arith.constant 0 : index
      %143 = vector.load %arg24[%c0_85, %c0_86] : memref<8x8xf32, #tpu.memory_space<vmem>>, vector<8x8xf32>
      tpu.vector_store %arg24[%c0_85, %c0_86], %142 {strides = array<i32>} : memref<8x8xf32, #tpu.memory_space<vmem>>, vector<8x8xf32>,
      %c0_i32_87 = arith.constant 0 : i32
      %144 = vector.broadcast %c0_i32_87 : i32 to vector<8x8xi32>
      %c0_88 = arith.constant 0 : index
      %c0_89 = arith.constant 0 : index
      %145 = vector.load %arg20[%c0_88, %c0_89] : memref<8x8xi32, #tpu.memory_space<vmem>>, vector<8x8xi32>
      tpu.vector_store %arg20[%c0_88, %c0_89], %144 {strides = array<i32>} : memref<8x8xi32, #tpu.memory_space<vmem>>, vector<8x8xi32>,
      %c0_90 = arith.constant 0 : index
      %c0_91 = arith.constant 0 : index
      %c0_92 = arith.constant 0 : index
      %146 = vector.load %arg3[%c0_90, %c0_91, %c0_92] : memref<8x8x32xf32, #tpu.memory_space<vmem>>, vector<8x8x32xf32>
      %147 = vector.shape_cast %146 : vector<8x8x32xf32> to vector<64x32xf32>
      %c0_93 = arith.constant 0 : index
      %c0_94 = arith.constant 0 : index
      %148 = vector.load %arg16[%c0_93, %c0_94] : memref<32x32xf32, #tpu.memory_space<vmem>>, vector<32x32xf32>
      %cst_95 = arith.constant dense<0.000000e+00> : vector<64x32xf32>
      %149 = tpu.matmul %147, %148, %cst_95 {dimension_numbers = #tpu.dot_dimension_numbers<[1], [0], [0], [1], [0, 0, 1, 1], [], []>} : vector<64x32xf32>, vector<32x32xf32>, vector<64x32xf32> -> vector<64x32xf32>
      %c0_96 = arith.constant 0 : index
      %c0_97 = arith.constant 0 : index
      %150 = vector.load %arg17[%c0_96, %c0_97] : memref<1x32xf32, #tpu.memory_space<vmem>>, vector<1x32xf32>
      %151 = vector.broadcast %150 : vector<1x32xf32> to vector<64x32xf32>
      %152 = arith.addf %149, %151 : vector<64x32xf32>
      %153 = vector.shape_cast %152 : vector<64x32xf32> to vector<8x8x32xf32>
      %c0_98 = arith.constant 0 : index
      %c0_99 = arith.constant 0 : index
      %c0_100 = arith.constant 0 : index
      %154 = vector.load %arg25[%c0_98, %c0_99, %c0_100] : memref<8x8x32xf32, #tpu.memory_space<vmem>>, vector<8x8x32xf32>
      tpu.vector_store %arg25[%c0_98, %c0_99, %c0_100], %153 {strides = array<i32>} : memref<8x8x32xf32, #tpu.memory_space<vmem>>, vector<8x8x32xf32>,
    } else {
    }
    %c0 = arith.constant 0 : index
    %c0_1 = arith.constant 0 : index
    %3 = vector.load %arg21[%c0, %c0_1] : memref<8x32xf32, #tpu.memory_space<vmem>>, vector<8x32xf32>
    %c0_2 = arith.constant 0 : index
    %c0_3 = arith.constant 0 : index
    %4 = vector.load %arg22[%c0_2, %c0_3] : memref<8x32xf32, #tpu.memory_space<vmem>>, vector<8x32xf32>
    %c0_4 = arith.constant 0 : index
    %c0_5 = arith.constant 0 : index
    %5 = vector.load %arg23[%c0_4, %c0_5] : memref<8x16xf32, #tpu.memory_space<vmem>>, vector<8x16xf32>
    %c0_6 = arith.constant 0 : index
    %c0_7 = arith.constant 0 : index
    %6 = vector.load %arg24[%c0_6, %c0_7] : memref<8x8xf32, #tpu.memory_space<vmem>>, vector<8x8xf32>
    %c0_8 = arith.constant 0 : index
    %c0_9 = arith.constant 0 : index
    %7 = vector.load %arg8[%c0_8, %c0_9] : memref<16x128xf32, #tpu.memory_space<vmem>>, vector<16x128xf32>
    %cst = arith.constant dense<0.000000e+00> : vector<8x128xf32>
    %8 = tpu.matmul %5, %7, %cst {dimension_numbers = #tpu.dot_dimension_numbers<[1], [0], [0], [1], [0, 0, 1, 1], [], []>} : vector<8x16xf32>, vector<16x128xf32>, vector<8x128xf32> -> vector<8x128xf32>
    %c0_10 = arith.constant 0 : index
    %c0_11 = arith.constant 0 : index
    %9 = vector.load %arg9[%c0_10, %c0_11] : memref<32x128xf32, #tpu.memory_space<vmem>>, vector<32x128xf32>
    %cst_12 = arith.constant dense<0.000000e+00> : vector<8x128xf32>
    %10 = tpu.matmul %3, %9, %cst_12 {dimension_numbers = #tpu.dot_dimension_numbers<[1], [0], [0], [1], [0, 0, 1, 1], [], []>} : vector<8x32xf32>, vector<32x128xf32>, vector<8x128xf32> -> vector<8x128xf32>
    %11 = arith.addf %8, %10 : vector<8x128xf32>
    %c0_13 = arith.constant 0 : index
    %c0_14 = arith.constant 0 : index
    %12 = vector.load %arg10[%c0_13, %c0_14] : memref<1x128xf32, #tpu.memory_space<vmem>>, vector<1x128xf32>
    %13 = vector.broadcast %12 : vector<1x128xf32> to vector<8x128xf32>
    %14 = arith.addf %11, %13 : vector<8x128xf32>
    %15 = vector.extract_strided_slice %14 {offsets = [0, 0], sizes = [8, 32], strides = [1, 1]} : vector<8x128xf32> to vector<8x32xf32>
    %16 = arith.negf %15 : vector<8x32xf32>
    %17 = math.exp %16 : vector<8x32xf32>
    %cst_15 = arith.constant 1.000000e+00 : f32
    %18 = vector.broadcast %cst_15 : f32 to vector<8x32xf32>
    %19 = arith.addf %18, %17 : vector<8x32xf32>
    %20 = arith.divf %18, %19 : vector<8x32xf32>
    %21 = vector.extract_strided_slice %14 {offsets = [0, 32], sizes = [8, 32], strides = [1, 1]} : vector<8x128xf32> to vector<8x32xf32>
    %22 = arith.negf %21 : vector<8x32xf32>
    %23 = math.exp %22 : vector<8x32xf32>
    %cst_16 = arith.constant 1.000000e+00 : f32
    %24 = vector.broadcast %cst_16 : f32 to vector<8x32xf32>
    %25 = arith.addf %24, %23 : vector<8x32xf32>
    %26 = arith.divf %24, %25 : vector<8x32xf32>
    %27 = vector.extract_strided_slice %14 {offsets = [0, 64], sizes = [8, 32], strides = [1, 1]} : vector<8x128xf32> to vector<8x32xf32>
    %28 = math.tanh %27 : vector<8x32xf32>
    %29 = vector.extract_strided_slice %14 {offsets = [0, 96], sizes = [8, 32], strides = [1, 1]} : vector<8x128xf32> to vector<8x32xf32>
    %30 = arith.negf %29 : vector<8x32xf32>
    %31 = math.exp %30 : vector<8x32xf32>
    %cst_17 = arith.constant 1.000000e+00 : f32
    %32 = vector.broadcast %cst_17 : f32 to vector<8x32xf32>
    %33 = arith.addf %32, %31 : vector<8x32xf32>
    %34 = arith.divf %32, %33 : vector<8x32xf32>
    %35 = arith.mulf %26, %4 : vector<8x32xf32>
    %36 = arith.mulf %20, %28 : vector<8x32xf32>
    %37 = arith.addf %35, %36 : vector<8x32xf32>
    %38 = math.tanh %37 : vector<8x32xf32>
    %39 = arith.mulf %34, %38 : vector<8x32xf32>
    %c0_18 = arith.constant 0 : index
    %c0_19 = arith.constant 0 : index
    %c0_20 = arith.constant 0 : index
    %40 = vector.load %arg25[%c0_18, %c0_19, %c0_20] : memref<8x8x32xf32, #tpu.memory_space<vmem>>, vector<8x8x32xf32>
    %c0_21 = arith.constant 0 : index
    %c0_22 = arith.constant 0 : index
    %41 = vector.load %arg14[%c0_21, %c0_22] : memref<32x32xf32, #tpu.memory_space<vmem>>, vector<32x32xf32>
    %cst_23 = arith.constant dense<0.000000e+00> : vector<8x32xf32>
    %42 = tpu.matmul %39, %41, %cst_23 {dimension_numbers = #tpu.dot_dimension_numbers<[1], [0], [0], [1], [0, 0, 1, 1], [], []>} : vector<8x32xf32>, vector<32x32xf32>, vector<8x32xf32> -> vector<8x32xf32>
    %c0_24 = arith.constant 0 : index
    %c0_25 = arith.constant 0 : index
    %43 = vector.load %arg15[%c0_24, %c0_25] : memref<1x32xf32, #tpu.memory_space<vmem>>, vector<1x32xf32>
    %44 = vector.broadcast %43 : vector<1x32xf32> to vector<8x32xf32>
    %45 = arith.addf %42, %44 : vector<8x32xf32>
    %46 = vector.shape_cast %45 : vector<8x32xf32> to vector<8x1x32xf32>
    %47 = vector.broadcast %46 : vector<8x1x32xf32> to vector<8x8x32xf32>
    %48 = arith.addf %47, %40 : vector<8x8x32xf32>
    %49 = math.tanh %48 : vector<8x8x32xf32>
    %c0_26 = arith.constant 0 : index
    %c0_27 = arith.constant 0 : index
    %50 = vector.load %arg18[%c0_26, %c0_27] : memref<1x32xf32, #tpu.memory_space<vmem>>, vector<1x32xf32>
    %51 = vector.shape_cast %50 : vector<1x32xf32> to vector<1x1x32xf32>
    %52 = vector.broadcast %51 : vector<1x1x32xf32> to vector<8x8x32xf32>
    %53 = arith.mulf %49, %52 : vector<8x8x32xf32>
    %cst_28 = arith.constant dense<0.000000e+00> : vector<8x8xf32>
    %54 = vector.multi_reduction <add>, %53, %cst_28 [2] : vector<8x8x32xf32> to vector<8x8xf32>
    %cst_29 = arith.constant 0.000000e+00 : f32
    %55 = vector.broadcast %cst_29 : f32 to vector<8x8xf32>
    %56 = arith.cmpf oeq, %6, %55 : vector<8x8xf32>
    %cst_30 = arith.constant 0xFF800000 : f32
    %57 = vector.broadcast %cst_30 : f32 to vector<8x8xf32>
    %58 = arith.select %56, %57, %54 : vector<8x8xi1>, vector<8x8xf32>
    %59 = tpu.iota {dimensions = array<i32: 1>} : vector<8x8xi32>
    %cst_31 = arith.constant dense<0xFF800000> : vector<8xf32>
    %60 = vector.multi_reduction <maximumf>, %58, %cst_31 [1] : vector<8x8xf32> to vector<8xf32>
    %61 = vector.shape_cast %60 : vector<8xf32> to vector<8x1xf32>
    %62 = vector.broadcast %61 : vector<8x1xf32> to vector<8x8xf32>
    %63 = arith.cmpf oeq, %58, %62 : vector<8x8xf32>
    %c8_i32 = arith.constant 8 : i32
    %64 = vector.broadcast %c8_i32 : i32 to vector<8x8xi32>
    %65 = arith.select %63, %59, %64 : vector<8x8xi1>, vector<8x8xi32>
    %cst_32 = arith.constant dense<2147483647> : vector<8xi32>
    %66 = vector.multi_reduction <minsi>, %65, %cst_32 [1] : vector<8x8xi32> to vector<8xi32>
    %67 = vector.shape_cast %66 : vector<8xi32> to vector<8x1xi32>
    %cst_33 = arith.constant -1.000000e+30 : f32
    %68 = vector.broadcast %cst_33 : f32 to vector<8x1xf32>
    %69 = arith.maximumf %61, %68 : vector<8x1xf32>
    %cst_34 = arith.constant 0.000000e+00 : f32
    %70 = vector.broadcast %cst_34 : f32 to vector<8x8xf32>
    %71 = arith.cmpf oeq, %6, %70 : vector<8x8xf32>
    %72 = vector.broadcast %69 : vector<8x1xf32> to vector<8x8xf32>
    %73 = arith.subf %54, %72 : vector<8x8xf32>
    %74 = math.exp %73 : vector<8x8xf32>
    %cst_35 = arith.constant 0.000000e+00 : f32
    %75 = vector.broadcast %cst_35 : f32 to vector<8x8xf32>
    %76 = arith.select %71, %75, %74 : vector<8x8xi1>, vector<8x8xf32>
    %cst_36 = arith.constant dense<0.000000e+00> : vector<8xf32>
    %77 = vector.multi_reduction <add>, %76, %cst_36 [1] : vector<8x8xf32> to vector<8xf32>
    %78 = vector.shape_cast %77 : vector<8xf32> to vector<8x1xf32>
    %cst_37 = arith.constant 0.000000e+00 : f32
    %79 = vector.broadcast %cst_37 : f32 to vector<8x1xf32>
    %80 = arith.cmpf oeq, %78, %79 : vector<8x1xf32>
    %cst_38 = arith.constant 1.000000e+00 : f32
    %81 = vector.broadcast %cst_38 : f32 to vector<8x1xf32>
    %82 = arith.select %80, %81, %78 : vector<8x1xi1>, vector<8x1xf32>
    %83 = vector.broadcast %82 : vector<8x1xf32> to vector<8x8xf32>
    %84 = arith.divf %76, %83 : vector<8x8xf32>
    %85 = vector.shape_cast %84 : vector<8x8xf32> to vector<8x1x8xf32>
    "tpu.trace_start"() <{level = 10 : i32, message = "bqt,bth->bqh"}> : () -> ()
    %cst_39 = arith.constant dense<0.000000e+00> : vector<8x1x32xf32>
    %86 = tpu.matmul %85, %40, %cst_39 {dimension_numbers = #tpu.dot_dimension_numbers<[2], [1], [1], [2], [0, 0, 0, 1, 1, 2], [0], [0]>} : vector<8x1x8xf32>, vector<8x8x32xf32>, vector<8x1x32xf32> -> vector<8x1x32xf32>
    "tpu.trace_stop"() : () -> ()
    %87 = vector.shape_cast %86 : vector<8x1x32xf32> to vector<8x32xf32>
    %c0_40 = arith.constant 0 : index
    %c0_41 = arith.constant 0 : index
    %88 = vector.load %arg11[%c0_40, %c0_41] : memref<32x32xf32, #tpu.memory_space<vmem>>, vector<32x32xf32>
    %cst_42 = arith.constant dense<0.000000e+00> : vector<8x32xf32>
    %89 = tpu.matmul %87, %88, %cst_42 {dimension_numbers = #tpu.dot_dimension_numbers<[1], [0], [0], [1], [0, 0, 1, 1], [], []>} : vector<8x32xf32>, vector<32x32xf32>, vector<8x32xf32> -> vector<8x32xf32>
    %c0_43 = arith.constant 0 : index
    %c0_44 = arith.constant 0 : index
    %90 = vector.load %arg12[%c0_43, %c0_44] : memref<32x32xf32, #tpu.memory_space<vmem>>, vector<32x32xf32>
    %cst_45 = arith.constant dense<0.000000e+00> : vector<8x32xf32>
    %91 = tpu.matmul %39, %90, %cst_45 {dimension_numbers = #tpu.dot_dimension_numbers<[1], [0], [0], [1], [0, 0, 1, 1], [], []>} : vector<8x32xf32>, vector<32x32xf32>, vector<8x32xf32> -> vector<8x32xf32>
    %92 = arith.addf %89, %91 : vector<8x32xf32>
    %c0_46 = arith.constant 0 : index
    %c0_47 = arith.constant 0 : index
    %93 = vector.load %arg13[%c0_46, %c0_47] : memref<1x32xf32, #tpu.memory_space<vmem>>, vector<1x32xf32>
    %94 = vector.broadcast %93 : vector<1x32xf32> to vector<8x32xf32>
    %95 = arith.addf %92, %94 : vector<8x32xf32>
    %96 = math.tanh %95 : vector<8x32xf32>
    %c0_48 = arith.constant 0 : index
    %c0_49 = arith.constant 0 : index
    %97 = vector.load %arg4[%c0_48, %c0_49] : memref<8x8xf32, #tpu.memory_space<vmem>>, vector<8x8xf32>
    %cst_50 = arith.constant dense<0.000000e+00> : vector<8xf32>
    %98 = vector.multi_reduction <add>, %97, %cst_50 [1] : vector<8x8xf32> to vector<8xf32>
    %99 = vector.shape_cast %98 : vector<8xf32> to vector<8x1xf32>
    %100 = arith.sitofp %arg1 : i32 to f32
    %101 = vector.broadcast %100 : f32 to vector<8x1xf32>
    %102 = arith.cmpf ogt, %99, %101 : vector<8x1xf32>
    %103 = arith.extui %102 : vector<8x1xi1> to vector<8x1xi32>
    %104 = arith.muli %67, %103 : vector<8x1xi32>
    %c1_i32 = arith.constant 1 : i32
    %105 = vector.broadcast %c1_i32 : i32 to vector<8x1xi32>
    %106 = arith.subi %105, %103 : vector<8x1xi32>
    %107 = vector.broadcast %arg1 : i32 to vector<8x1xi32>
    %108 = arith.muli %106, %107 : vector<8x1xi32>
    %109 = arith.addi %104, %108 : vector<8x1xi32>
    %110 = vector.broadcast %109 : vector<8x1xi32> to vector<8x8xi32>
    %111 = arith.cmpi eq, %59, %110 : vector<8x8xi32>
    %112 = arith.extui %111 : vector<8x8xi1> to vector<8x8xi32>
    %113 = arith.sitofp %112 : vector<8x8xi32> to vector<8x8xf32>
    %cst_51 = arith.constant 1.000000e+00 : f32
    %114 = vector.broadcast %cst_51 : f32 to vector<8x8xf32>
    %115 = arith.subf %114, %113 : vector<8x8xf32>
    %116 = arith.mulf %6, %115 : vector<8x8xf32>
    %117 = vector.shape_cast %113 : vector<8x8xf32> to vector<8x1x8xf32>
    %c0_52 = arith.constant 0 : index
    %c0_53 = arith.constant 0 : index
    %c0_54 = arith.constant 0 : index
    %118 = vector.load %arg2[%c0_52, %c0_53, %c0_54] : memref<8x8x16xf32, #tpu.memory_space<vmem>>, vector<8x8x16xf32>
    "tpu.trace_start"() <{level = 10 : i32, message = "bqt,btd->bqd"}> : () -> ()
    %cst_55 = arith.constant dense<0.000000e+00> : vector<8x1x16xf32>
    %119 = tpu.matmul %117, %118, %cst_55 {dimension_numbers = #tpu.dot_dimension_numbers<[2], [1], [1], [2], [0, 0, 0, 1, 1, 2], [0], [0]>} : vector<8x1x8xf32>, vector<8x8x16xf32>, vector<8x1x16xf32> -> vector<8x1x16xf32>
    "tpu.trace_stop"() : () -> ()
    %120 = vector.shape_cast %119 : vector<8x1x16xf32> to vector<8x16xf32>
    %121 = vector.shape_cast %58 : vector<8x8xf32> to vector<1x8x8xf32>
    %c0_56 = arith.constant 0 : index
    %c0_57 = arith.constant 0 : index
    %c0_58 = arith.constant 0 : index
    %122 = vector.load %arg19[%c0_56, %c0_57, %c0_58] : memref<1x8x8xf32, #tpu.memory_space<vmem>>, vector<1x8x8xf32>
    tpu.vector_store %arg19[%c0_56, %c0_57, %c0_58], %121 {strides = array<i32>} : memref<1x8x8xf32, #tpu.memory_space<vmem>>, vector<1x8x8xf32>,
    %123 = vector.broadcast %arg1 : i32 to vector<8x8xi32>
    %124 = arith.cmpi eq, %59, %123 : vector<8x8xi32>
    %c0_59 = arith.constant 0 : index
    %c0_60 = arith.constant 0 : index
    %125 = vector.load %arg20[%c0_59, %c0_60] : memref<8x8xi32, #tpu.memory_space<vmem>>, vector<8x8xi32>
    %126 = vector.shape_cast %109 : vector<8x1xi32> to vector<8x1xi32>
    %127 = vector.broadcast %126 : vector<8x1xi32> to vector<8x8xi32>
    %128 = arith.select %124, %127, %125 : vector<8x8xi1>, vector<8x8xi32>
    %c0_61 = arith.constant 0 : index
    %c0_62 = arith.constant 0 : index
    %129 = vector.load %arg20[%c0_61, %c0_62] : memref<8x8xi32, #tpu.memory_space<vmem>>, vector<8x8xi32>
    tpu.vector_store %arg20[%c0_61, %c0_62], %128 {strides = array<i32>} : memref<8x8xi32, #tpu.memory_space<vmem>>, vector<8x8xi32>,
    %c0_63 = arith.constant 0 : index
    %c0_64 = arith.constant 0 : index
    %130 = vector.load %arg21[%c0_63, %c0_64] : memref<8x32xf32, #tpu.memory_space<vmem>>, vector<8x32xf32>
    tpu.vector_store %arg21[%c0_63, %c0_64], %96 {strides = array<i32>} : memref<8x32xf32, #tpu.memory_space<vmem>>, vector<8x32xf32>,
    %c0_65 = arith.constant 0 : index
    %c0_66 = arith.constant 0 : index
    %131 = vector.load %arg22[%c0_65, %c0_66] : memref<8x32xf32, #tpu.memory_space<vmem>>, vector<8x32xf32>
    tpu.vector_store %arg22[%c0_65, %c0_66], %37 {strides = array<i32>} : memref<8x32xf32, #tpu.memory_space<vmem>>, vector<8x32xf32>,
    %c0_67 = arith.constant 0 : index
    %c0_68 = arith.constant 0 : index
    %132 = vector.load %arg23[%c0_67, %c0_68] : memref<8x16xf32, #tpu.memory_space<vmem>>, vector<8x16xf32>
    tpu.vector_store %arg23[%c0_67, %c0_68], %120 {strides = array<i32>} : memref<8x16xf32, #tpu.memory_space<vmem>>, vector<8x16xf32>,
    %c0_69 = arith.constant 0 : index
    %c0_70 = arith.constant 0 : index
    %133 = vector.load %arg24[%c0_69, %c0_70] : memref<8x8xf32, #tpu.memory_space<vmem>>, vector<8x8xf32>
    tpu.vector_store %arg24[%c0_69, %c0_70], %116 {strides = array<i32>} : memref<8x8xf32, #tpu.memory_space<vmem>>, vector<8x8xf32>,
    return
  }
  func.func @transform_0(%arg0: i32, %arg1: i32) -> (i32, i32, i32) {
    %c0_i32 = arith.constant 0 : i32
    %c0_i32_0 = arith.constant 0 : i32
    %c0_i32_1 = arith.constant 0 : i32
    return %arg0, %c0_i32, %c0_i32_0 : i32, i32, i32
  }
  func.func @transform_1(%arg0: i32, %arg1: i32) -> (i32, i32, i32) {
    %c0_i32 = arith.constant 0 : i32
    %c0_i32_0 = arith.constant 0 : i32
    %c0_i32_1 = arith.constant 0 : i32
    return %arg0, %c0_i32, %c0_i32_0 : i32, i32, i32
  }
  func.func @transform_2(%arg0: i32, %arg1: i32) -> (i32, i32) {
    %c0_i32 = arith.constant 0 : i32
    %c0_i32_0 = arith.constant 0 : i32
    return %arg0, %c0_i32 : i32, i32
  }
  func.func @transform_3(%arg0: i32, %arg1: i32) -> (i32, i32) {
    %c0_i32 = arith.constant 0 : i32
    %c0_i32_0 = arith.constant 0 : i32
    return %arg0, %c0_i32 : i32, i32
  }
  func.func @transform_4(%arg0: i32, %arg1: i32) -> (i32, i32) {
    %c0_i32 = arith.constant 0 : i32
    %c0_i32_0 = arith.constant 0 : i32
    return %arg0, %c0_i32 : i32, i32
  }
  func.func @transform_5(%arg0: i32, %arg1: i32) -> (i32, i32) {
    %c0_i32 = arith.constant 0 : i32
    %c0_i32_0 = arith.constant 0 : i32
    %c0_i32_1 = arith.constant 0 : i32
    return %c0_i32, %c0_i32_0 : i32, i32
  }
  func.func @transform_6(%arg0: i32, %arg1: i32) -> (i32, i32) {
    %c0_i32 = arith.constant 0 : i32
    %c0_i32_0 = arith.constant 0 : i32
    %c0_i32_1 = arith.constant 0 : i32
    return %c0_i32, %c0_i32_0 : i32, i32
  }
  func.func @transform_7(%arg0: i32, %arg1: i32) -> (i32, i32) {
    %c0_i32 = arith.constant 0 : i32
    %c0_i32_0 = arith.constant 0 : i32
    %c0_i32_1 = arith.constant 0 : i32
    return %c0_i32, %c0_i32_0 : i32, i32
  }
  func.func @transform_8(%arg0: i32, %arg1: i32) -> (i32, i32) {
    %c0_i32 = arith.constant 0 : i32
    %c0_i32_0 = arith.constant 0 : i32
    %c0_i32_1 = arith.constant 0 : i32
    return %c0_i32, %c0_i32_0 : i32, i32
  }
  func.func @transform_9(%arg0: i32, %arg1: i32) -> (i32, i32) {
    %c0_i32 = arith.constant 0 : i32
    %c0_i32_0 = arith.constant 0 : i32
    %c0_i32_1 = arith.constant 0 : i32
    return %c0_i32, %c0_i32_0 : i32, i32
  }
  func.func @transform_10(%arg0: i32, %arg1: i32) -> (i32, i32) {
    %c0_i32 = arith.constant 0 : i32
    %c0_i32_0 = arith.constant 0 : i32
    %c0_i32_1 = arith.constant 0 : i32
    return %c0_i32, %c0_i32_0 : i32, i32
  }
  func.func @transform_11(%arg0: i32, %arg1: i32) -> (i32, i32) {
    %c0_i32 = arith.constant 0 : i32
    %c0_i32_0 = arith.constant 0 : i32
    %c0_i32_1 = arith.constant 0 : i32
    return %c0_i32, %c0_i32_0 : i32, i32
  }
  func.func @transform_12(%arg0: i32, %arg1: i32) -> (i32, i32) {
    %c0_i32 = arith.constant 0 : i32
    %c0_i32_0 = arith.constant 0 : i32
    %c0_i32_1 = arith.constant 0 : i32
    return %c0_i32, %c0_i32_0 : i32, i32
  }
  func.func @transform_13(%arg0: i32, %arg1: i32) -> (i32, i32) {
    %c0_i32 = arith.constant 0 : i32
    %c0_i32_0 = arith.constant 0 : i32
    %c0_i32_1 = arith.constant 0 : i32
    return %c0_i32, %c0_i32_0 : i32, i32
  }
  func.func @transform_14(%arg0: i32, %arg1: i32) -> (i32, i32) {
    %c0_i32 = arith.constant 0 : i32
    %c0_i32_0 = arith.constant 0 : i32
    %c0_i32_1 = arith.constant 0 : i32
    return %c0_i32, %c0_i32_0 : i32, i32
  }
  func.func @transform_15(%arg0: i32, %arg1: i32) -> (i32, i32) {
    %c0_i32 = arith.constant 0 : i32
    %c0_i32_0 = arith.constant 0 : i32
    %c0_i32_1 = arith.constant 0 : i32
    return %c0_i32, %c0_i32_0 : i32, i32
  }
  func.func @transform_16(%arg0: i32, %arg1: i32) -> (i32, i32) {
    %c0_i32 = arith.constant 0 : i32
    %c0_i32_0 = arith.constant 0 : i32
    %c0_i32_1 = arith.constant 0 : i32
    return %c0_i32, %c0_i32_0 : i32, i32
  }
  func.func @transform_17(%arg0: i32, %arg1: i32) -> (i32, i32, i32) {
    %c0_i32 = arith.constant 0 : i32
    %c0_i32_0 = arith.constant 0 : i32
    return %arg1, %arg0, %c0_i32 : i32, i32, i32
  }
  func.func @transform_18(%arg0: i32, %arg1: i32) -> (i32, i32) {
    %c0_i32 = arith.constant 0 : i32
    %c0_i32_0 = arith.constant 0 : i32
    return %arg0, %c0_i32 : i32, i32
  }
  func.func @transform_19(%arg0: i32, %arg1: i32) -> (i32, i32) {
    %c0_i32 = arith.constant 0 : i32
    %c0_i32_0 = arith.constant 0 : i32
    return %arg0, %c0_i32 : i32, i32
  }
  func.func @transform_20(%arg0: i32, %arg1: i32) -> (i32, i32) {
    %c0_i32 = arith.constant 0 : i32
    %c0_i32_0 = arith.constant 0 : i32
    return %arg0, %c0_i32 : i32, i32
  }
}

</mosaic_0001>

<bundles_post_ra>
// kernel: tpu_custom_call.1
= control target key start
LH: loop header
LB: loop body
LE: loop exit
PB: predicated region body
PF: predicated region fallthrough
CT: control target
= control target key end

     0   :  { %s5338_s0 = inlined_call_operand.hbm [shape: f32[8,8,16], index: 0, kind: input, shape index: {}]   ;;  %s5339_s1 = inlined_call_operand.hbm [shape: f32[8,8,32], index: 1, kind: input, shape index: {}]   ;;  %s5340_s2 = inlined_call_operand.hbm [shape: f32[8,8], index: 2, kind: input, shape index: {}]   ;;  %s5341_s3 = inlined_call_operand.hbm [shape: f32[8,32], index: 3, kind: input, shape index: {}]   ;;  %s5342_s4 = inlined_call_operand.hbm [shape: f32[8,32], index: 4, kind: input, shape index: {}]   ;;  %s5343_s5 = inlined_call_operand.vmem [shape: f32[1,16], index: 5, kind: input, shape index: {}]   ;;  %s5344_s6 = inlined_call_operand.hbm [shape: f32[16,128], index: 6, kind: input, shape index: {}]   ;;  %s5345_s7 = inlined_call_operand.hbm [shape: f32[32,128], index: 7, kind: input, shape index: {}]   ;;  %s5346_s8 = inlined_call_operand.vmem [shape: f32[1,128], index: 8, kind: input, shape index: {}]   ;;  %s5347_s9 = inlined_call_operand.vmem [shape: f32[32,32], index: 9, kind: input, shape index: {}]   ;;  %s5348_s10 = inlined_call_operand.hbm [shape: f32[32,32], index: 10, kind: input, shape index: {}]   ;;  %s5349_s11 = inlined_call_operand.vmem [shape: f32[1,32], index: 11, kind: input, shape index: {}]   ;;  %s5350_s12 = inlined_call_operand.hbm [shape: f32[32,32], index: 12, kind: input, shape index: {}]   ;;  %s5351_s13 = inlined_call_operand.vmem [shape: f32[1,32], index: 13, kind: input, shape index: {}]   ;;  %s5352_s14 = inlined_call_operand.hbm [shape: f32[32,32], index: 14, kind: input, shape index: {}]   ;;  %s5353_s15 = inlined_call_operand.vmem [shape: f32[1,32], index: 15, kind: input, shape index: {}]   ;;  %s5354_s16 = inlined_call_operand.vmem [shape: f32[1,32], index: 16, kind: input, shape index: {}]   ;;  %s5355_s17 = inlined_call_operand.hbm [shape: f32[8,8,8], index: 17, kind: output, shape index: {0}]   ;;  %s5356_s18 = inlined_call_operand.hbm [shape: s32[8,8], index: 18, kind: output, shape index: {1}]   ;;  %s5357_s19 = inlined_call_operand.hbm [shape: f32[8,32], index: 19, kind: output, shape index: {2}]   ;;  %s5358_s20 = inlined_call_operand.hbm [shape: f32[8,32], index: 20, kind: output, shape index: {3}]  }
   0x1   :  { %5392 = sst [smem:[#allocation46_spill]] %s5338_s0 }
   0x2   :  { %5393 = sst [smem:[#allocation47_spill]] %s5339_s1 }
   0x3   :  { %5394 = sst [smem:[#allocation48_spill]] %s5340_s2 }
   0x4   :  { %5395 = sst [smem:[#allocation49_spill]] %s5341_s3 }
   0x5   :  { %5396 = sst [smem:[#allocation50_spill]] %s5342_s4 }
   0x6   :  { %5397 = sst [smem:[#allocation51_spill]] %s5344_s6 }
   0x7   :  { %5398 = sst [smem:[#allocation52_spill]] %s5347_s9 }
   0x8   :  { %5399 = sst [smem:[#allocation53_spill]] %s5348_s10 }
   0x9   :  { %5400 = sst [smem:[#allocation54_spill]] %s5349_s11 }
   0xa   :  { %5401 = sst [smem:[#allocation55_spill]] %s5354_s16 }
   0xb   :  { %5402 = sst [smem:[#allocation56_spill]] %s5355_s17 }
   0xc   :  { %5403 = sst [smem:[#allocation57_spill]] %s5356_s18 }
   0xd   :  { %5404 = sst [smem:[#allocation58_spill]] %s5357_s19 }
   0xe   :  { %5405 = sst [smem:[#allocation59_spill]] %s5358_s20 }
   0xf   :  { %26 = vsyncpa [#allocation6], 0 }
  0x10   :  { %27 = vsyncpa [#allocation9], 0 }
  0x11   :  { %28 = vsyncpa [#allocation12], 0 }
  0x12   :  { %29 = vsyncpa [#allocation15], 0 }
  0x13   :  { %30 = vsyncpa [#allocation18], 0 }
  0x14   :  { %31 = vsyncpa [#allocation21], 0 }
  0x15   :  { %32 = vsyncpa [#allocation7], 0 }
  0x16   :  { %34 = vsyncpa [#allocation7 + $0x1], 0 }
  0x17   :  { %35 = vsyncpa [#allocation24], 0 }
  0x18   :  { %36 = vsyncpa [#allocation27], 0  ;;  %s4562_s1 = smov 0   ;;  %s4564_s22 = smov 0  }
  0x19   :  { %s4566_s23 = smov 0   ;;  %s4568_s24 = smov 0  }
  0x1a   :  { %s4570_s2 = smov 0   ;;  %s4572_s25 = smov 0  }
  0x1b LB: > { %5406 = sst [smem:[#allocation37_spill]] %s4410_s1  ;;  %s3398_s3 = sadd.s32 4294967295, %s4430_s25   ;;  %s4430_s25 = sphi %s4572_s25, %s42_s25   ;;  %s4426_s2 = sphi %s4570_s2, %s5457_s2   ;;  %s4422_s24 = sphi %s4568_s24, %s5456_s24   ;;  %s4418_s23 = sphi %s4566_s23, %s5455_s23   ;;  %s4414_s22 = sphi %s4564_s22, %s5459_s22   ;;  %s4410_s1 = sphi %s4562_s1, %s5458_s1  }
  0x1c   : > { %5407 = sst [smem:[#allocation38_spill]] %s4418_s23  ;;  %s3399_s26 = sadd.s32 4294967294, %s4430_s25  }
  0x1d   : > { %5408 = sst [smem:[#allocation39_spill]] %s4426_s2  ;;  %s51_s27 = sadd.s32 1, %s4426_s2 }
  0x1e   : > { %5409 = sst [smem:[#allocation40_spill]] %s4430_s25  ;;  %s445_s28 = sadd.s32 1, %s4418_s23 }
  0x1f   : > { %p52_p0 = scmp.ge.s32.totalorder %s51_s27, 8  ;;  %p455_p1 = scmp.ne.s32.totalorder %s4418_s23, %s4414_s22 }
  0x20   : > { %p4598_p2 = scmp.eq.s32.totalorder %s3398_s3, 7  ;;  %p461_p3 = scmp.ne.s32.totalorder %s4414_s22, %s4410_s1 }
  0x21   : > { %s5461_s27 = smov (%p52_p0, %s51_s27), 0  ;;  %p462_p5 = scmp.eq.s32.totalorder %s3399_s26, 7 }
  0x22   : > { %s5410_s4 = scalar_select %p4598_p2, 1, 0 }
  0x23   : > { %5412 = sst [smem:[#allocation42_spill]] %s5461_s27  ;;  %p4608_p4 = por %p4598_p2, %p455_p1 }
  0x24   : > { %5411 = sst [smem:[#allocation41_spill]] %s5410_s4  ;;  %s440_s30 = ssub.s32 %s4426_s2, %s5461_s27 }
  0x25   : > { %s5413_s29 = scalar_select %p4608_p4, 1, 0 }
  0x26   : > { %p3400_p6 = scmp.ge.s32.totalorder %s4430_s25, 1  ;;  %p443_p7 = scmp.eq.s32.totalorder %s440_s30, 0 }
  0x27   : > { %5414 = sst [smem:[#allocation43_spill]] %s5413_s29  ;;  %p4615_p8 = por %p462_p5, %p461_p3 }
  0x28   : > { %p547_p9 = scmp.lt.s32.totalorder %s4430_s25, 9  ;;  %p4627_p11 = scmp.eq.s32.totalorder %s3398_s3, 0 }
  0x29   : > { %s5415_s0 = scalar_select %p4615_p8, 1, 0 }
  0x2a   : > { %s4621_s21 = scalar_select %p443_p7, %s4418_s23, %s445_s28  }
  0x2b   : > { %5416 = sst [smem:[#allocation44_spill]] %s5415_s0  ;;  %p4623_p10 = pnand %p3400_p6, %p547_p9 }
  0x2c   : > { %5417 = sst [smem:[#allocation45_spill]] %s4621_s21  ;;  %s4432_s26 = smov [#allocation8]  }
  0x2d   : > { %s5418_s1 = scalar_select %p4623_p10, 1, 0 }
  0x2e   : > { %s5419_s19 = scalar_select %p4627_p11, 1, 0 }
  0x2f   : > { %p3782_p12 = pneg %p4623_p10  ;;  %s578_s30 = sshll.u32 %s4432_s26, 4  ;;  %s579_s30 = int_to_ptr.vmem [resolvable:$true] %s578_s30 }
  0x30   : > { %s4433_s28 = smov [#allocation11]   ;;  %s5421_s23 = sld [smem:[#allocation47_spill]] }
  0x31   : > { %p4635_p13 = pnand %p4627_p11, %p3782_p12  ;;  %s607_s2 = sshll.u32 %s4433_s28, 4  ;;  %s4639_s2 = int_to_ptr.vmem [resolvable:$true] %s607_s2 }
  0x33   : > { %p4649_p1 = pneg %p4635_p13 }
  0x36   : > { %s5422_s0 = smov %s5421_s23  ;;  %s3962_s25 = scalar_lea.hbm %s5421_s23, 1024 }
  0x37   : > { %p3963_p0 = scmp.ne.s32.totalorder %s5422_s0, %s3962_s25  ;;  %p3969_p6 = scmp.lt.u32.totalorder %s3962_s25, %s5422_s0 }
  0x39   : > { %p3965_p3 = pnand %p4649_p1, %p3963_p0 }
  0x3b   : > { %p3966_p5 = pneg %p3965_p3 }
  0x3d   : > { %p3971_p7 = pnand %p3969_p6, %p3966_p5 }
  0x3f   : > { %3974 = shalt.err (!%p3971_p7)
}
  0x40   : > { %s3975_s23 = scalar_lea.vmem %s579_s30, 1024  ;;  %p3983_p4 = scmp.lt.s32.totalorder %s579_s30, %s579_s30 }
  0x41   : > { %p3976_p9 = scmp.ne.s32.totalorder %s579_s30, %s3975_s23  ;;  %p3984_p2 = scmp.lt.s32.totalorder %s3975_s23, %s3975_s23 }
  0x43   : > { %p3978_p12 = pnand %p3976_p9, %p4649_p1  ;;  %p3985_p11 = por %p3984_p2, %p3983_p4 }
  0x45   : > { %p3979_p8 = pneg %p3978_p12 }
  0x47   : > { %p3986_p10 = pnand %p3985_p11, %p3979_p8 }
  0x49   : > { %3989 = shalt.err (!%p3986_p10)
}
  0x4a   : > { %s5386_s11 = smov 128   ;;  %s5388_s20 = smov 8  }
  0x4b   : > { %3788 = dma.hbm_to_vmem [thread:$0]  (!%p4635_p13), %s5422_s0, 1024, %s579_s30, [#allocation9], %s5386_s11, %s5386_s11, %s5388_s20  }
  0x4c   : > { %s5424_s28 = sld [smem:[#allocation49_spill]] }
  0x52   : > { %s3990_s18 = scalar_lea.hbm %s5424_s28, 128 }
  0x53   : > { %p3991_p2 = scmp.ne.s32.totalorder %s5424_s28, %s3990_s18  ;;  %p3997_p10 = scmp.lt.u32.totalorder %s3990_s18, %s5424_s28 }
  0x55   : > { %p3993_p4 = pnand %p3991_p2, %p4649_p1 }
  0x57   : > { %p3994_p8 = pneg %p3993_p4 }
  0x59   : > { %p3999_p11 = pnand %p3997_p10, %p3994_p8 }
  0x5b   : > { %4002 = shalt.err (!%p3999_p11)
}
  0x5c   : > { %s4003_s30 = scalar_lea.vmem %s4639_s2, 128  ;;  %p4011_p6 = scmp.lt.s32.totalorder %s4639_s2, %s4639_s2 }
  0x5d   : > { %p4004_p0 = scmp.ne.s32.totalorder %s4639_s2, %s4003_s30  ;;  %p4012_p7 = scmp.lt.s32.totalorder %s4003_s30, %s4003_s30 }
  0x5f   : > { %p4006_p3 = pnand %p4004_p0, %p4649_p1  ;;  %p4013_p9 = por %p4012_p7, %p4011_p6 }
  0x61   : > { %p4007_p5 = pneg %p4006_p3 }
  0x63   : > { %p4014_p12 = pnand %p4013_p9, %p4007_p5 }
  0x65   : > { %4017 = shalt.err (!%p4014_p12)
}
  0x66   : > { %3794 = dma.hbm_to_vmem [thread:$0]  (!%p4635_p13), %s5424_s28, 128, %s4639_s2, [#allocation12]  }
  0x67   : > { %s4436_s18 = smov [#allocation14]   ;;  %s4437_s25 = smov [#allocation17]  }
  0x68   : > { %s633_s4 = sshll.u32 %s4436_s18, 4  ;;  %s665_s29 = sshll.u32 %s4437_s25, 4  ;;  %s634_s4 = int_to_ptr.vmem [resolvable:$true] %s633_s4  ;;  %s666_s29 = int_to_ptr.vmem [resolvable:$true] %s665_s29 }
  0x69   : > { %s5425_s6 = sld [smem:[#allocation51_spill]] }
  0x6f   : > { %s4018_s23 = scalar_lea.hbm %s5425_s6, 256 }
  0x70   : > { %p4019_p2 = scmp.ne.s32.totalorder %s5425_s6, %s4018_s23  ;;  %p4025_p10 = scmp.lt.u32.totalorder %s4018_s23, %s5425_s6 }
  0x72   : > { %p4021_p4 = pnand %p4019_p2, %p4649_p1 }
  0x74   : > { %p4022_p8 = pneg %p4021_p4 }
  0x76   : > { %p4027_p11 = pnand %p4025_p10, %p4022_p8 }
  0x78   : > { %4030 = shalt.err (!%p4027_p11)
}
  0x79   : > { %s4031_s2 = scalar_lea.vmem %s634_s4, 256  ;;  %p4039_p6 = scmp.lt.s32.totalorder %s634_s4, %s634_s4 }
  0x7a   : > { %p4032_p0 = scmp.ne.s32.totalorder %s634_s4, %s4031_s2  ;;  %p4040_p7 = scmp.lt.s32.totalorder %s4031_s2, %s4031_s2 }
  0x7c   : > { %p4034_p3 = pnand %p4032_p0, %p4649_p1  ;;  %p4041_p9 = por %p4040_p7, %p4039_p6 }
  0x7e   : > { %p4035_p5 = pneg %p4034_p3 }
  0x80   : > { %p4042_p12 = pnand %p4041_p9, %p4035_p5 }
  0x82   : > { %4045 = shalt.err (!%p4042_p12)
}
  0x83   : > { %s5426_s11 = smov 8   ;;  %s5427_s17 = smov 128  }
  0x84   : > { %3800 = dma.hbm_to_vmem [thread:$0]  (!%p4635_p13), %s5425_s6, 256, %s634_s4, [#allocation15], %s5427_s17, %s5427_s17, %s5426_s11  }
  0x85   : > { %s5428_s10 = sld [smem:[#allocation53_spill]] }
  0x8b   : > { %s4046_s3 = scalar_lea.hbm %s5428_s10, 512 }
  0x8c   : > { %p4047_p2 = scmp.ne.s32.totalorder %s5428_s10, %s4046_s3  ;;  %p4053_p10 = scmp.lt.u32.totalorder %s4046_s3, %s5428_s10 }
  0x8e   : > { %p4049_p4 = pnand %p4047_p2, %p4649_p1 }
  0x90   : > { %p4050_p8 = pneg %p4049_p4 }
  0x92   : > { %p4055_p11 = pnand %p4053_p10, %p4050_p8 }
  0x94   : > { %4058 = shalt.err (!%p4055_p11)
}
  0x95   : > { %s4059_s20 = scalar_lea.vmem %s666_s29, 512  ;;  %p4067_p6 = scmp.lt.s32.totalorder %s666_s29, %s666_s29 }
  0x96   : > { %p4060_p0 = scmp.ne.s32.totalorder %s666_s29, %s4059_s20  ;;  %p4068_p7 = scmp.lt.s32.totalorder %s4059_s20, %s4059_s20 }
  0x98   : > { %p4062_p3 = pnand %p4060_p0, %p4649_p1  ;;  %p4069_p9 = por %p4068_p7, %p4067_p6 }
  0x9a   : > { %p4063_p5 = pneg %p4062_p3 }
  0x9c   : > { %p4070_p12 = pnand %p4069_p9, %p4063_p5 }
  0x9e   : > { %4073 = shalt.err (!%p4070_p12)
}
  0x9f   : > { %3806 = dma.hbm_to_vmem [thread:$0]  (!%p4635_p13), %s5428_s10, 512, %s666_s29, [#allocation18], %s5427_s17, %s5427_s17, %s5426_s11  }
  0xa0   : > { %s4438_s25 = smov [#allocation5]   ;;  %s4439_s3 = smov [#allocation10]  }
  0xa1   : > { %s562_s21 = sshll.u32 %s4438_s25, 4  ;;  %s594_s23 = sshll.u32 %s4439_s3, 4  ;;  %s563_s21 = int_to_ptr.vmem [resolvable:$true] %s562_s21  ;;  %s595_s23 = int_to_ptr.vmem [resolvable:$true] %s594_s23 }
  0xa2   : > { %s5429_s2 = sld [smem:[#allocation46_spill]] }
  0xa8   : > { %s5430_s20 = smov %s5429_s2  ;;  %s4074_s0 = scalar_lea.hbm %s5429_s2, 1024 }
  0xa9   : > { %p4075_p2 = scmp.ne.s32.totalorder %s5430_s20, %s4074_s0  ;;  %p4081_p10 = scmp.lt.u32.totalorder %s4074_s0, %s5430_s20 }
  0xab   : > { %p4077_p4 = pnand %p4075_p2, %p4649_p1 }
  0xad   : > { %p4078_p8 = pneg %p4077_p4 }
  0xaf   : > { %p4083_p11 = pnand %p4081_p10, %p4078_p8 }
  0xb1   : > { %4086 = shalt.err (!%p4083_p11)
}
  0xb2   : > { %s4087_s29 = scalar_lea.vmem %s563_s21, 1024  ;;  %p4095_p6 = scmp.lt.s32.totalorder %s563_s21, %s563_s21 }
  0xb3   : > { %p4088_p0 = scmp.ne.s32.totalorder %s563_s21, %s4087_s29  ;;  %p4096_p7 = scmp.lt.s32.totalorder %s4087_s29, %s4087_s29 }
  0xb5   : > { %p4090_p3 = pnand %p4088_p0, %p4649_p1  ;;  %p4097_p9 = por %p4096_p7, %p4095_p6 }
  0xb7   : > { %p4091_p5 = pneg %p4090_p3 }
  0xb9   : > { %p4098_p12 = pnand %p4097_p9, %p4091_p5 }
  0xbb   : > { %4101 = shalt.err (!%p4098_p12)
}
  0xbc   : > { %3785 = dma.hbm_to_vmem [thread:$0]  (!%p4635_p13), %s5430_s20, 1024, %s563_s21, [#allocation6], %s5427_s17, %s5427_s17, %s5426_s11  }
  0xbd   : > { %s5431_s18 = sld [smem:[#allocation48_spill]] }
  0xc3   : > { %s4102_s25 = scalar_lea.hbm %s5431_s18, 128 }
  0xc4   : > { %p4103_p2 = scmp.ne.s32.totalorder %s5431_s18, %s4102_s25  ;;  %p4109_p10 = scmp.lt.u32.totalorder %s4102_s25, %s5431_s18 }
  0xc6   : > { %p4105_p4 = pnand %p4103_p2, %p4649_p1 }
  0xc8   : > { %p4106_p8 = pneg %p4105_p4 }
  0xca   : > { %p4111_p11 = pnand %p4109_p10, %p4106_p8 }
  0xcc   : > { %4114 = shalt.err (!%p4111_p11)
}
  0xcd   : > { %s4115_s4 = scalar_lea.vmem %s595_s23, 128  ;;  %p4123_p6 = scmp.lt.s32.totalorder %s595_s23, %s595_s23 }
  0xce   : > { %p4116_p0 = scmp.ne.s32.totalorder %s595_s23, %s4115_s4  ;;  %p4124_p7 = scmp.lt.s32.totalorder %s4115_s4, %s4115_s4 }
  0xd0   : > { %p4118_p3 = pnand %p4116_p0, %p4649_p1  ;;  %p4125_p9 = por %p4124_p7, %p4123_p6 }
  0xd2   : > { %p4119_p5 = pneg %p4118_p3 }
  0xd4   : > { %p4126_p12 = pnand %p4125_p9, %p4119_p5 }
  0xd6   : > { %4129 = shalt.err (!%p4126_p12)
}
  0xd7   : > { %3791 = dma.hbm_to_vmem [thread:$0]  (!%p4635_p13), %s5431_s18, 128, %s595_s23, [#allocation9]  }
  0xd8   : > { %s4440_s6 = smov [#allocation13]   ;;  %s4441_s0 = smov [#allocation16]  }
  0xd9   : > { %s620_s16 = sshll.u32 %s4440_s6, 4  ;;  %s646_s28 = sshll.u32 %s4441_s0, 4  ;;  %s621_s16 = int_to_ptr.vmem [resolvable:$true] %s620_s16  ;;  %s647_s28 = int_to_ptr.vmem [resolvable:$true] %s646_s28 }
  0xda   : > { %s5432_s30 = sld [smem:[#allocation50_spill]] }
  0xe0   : > { %s4130_s9 = scalar_lea.hbm %s5432_s30, 128 }
  0xe1   : > { %p4131_p2 = scmp.ne.s32.totalorder %s5432_s30, %s4130_s9  ;;  %p4137_p10 = scmp.lt.u32.totalorder %s4130_s9, %s5432_s30 }
  0xe3   : > { %p4133_p4 = pnand %p4131_p2, %p4649_p1 }
  0xe5   : > { %p4134_p8 = pneg %p4133_p4 }
  0xe7   : > { %p4139_p11 = pnand %p4137_p10, %p4134_p8 }
  0xe9   : > { %4142 = shalt.err (!%p4139_p11)
}
  0xea   : > { %s4143_s23 = scalar_lea.vmem %s621_s16, 128  ;;  %p4151_p6 = scmp.lt.s32.totalorder %s621_s16, %s621_s16 }
  0xeb   : > { %p4144_p0 = scmp.ne.s32.totalorder %s621_s16, %s4143_s23  ;;  %p4152_p7 = scmp.lt.s32.totalorder %s4143_s23, %s4143_s23 }
  0xed   : > { %p4146_p3 = pnand %p4144_p0, %p4649_p1  ;;  %p4153_p9 = por %p4152_p7, %p4151_p6 }
  0xef   : > { %p4147_p5 = pneg %p4146_p3 }
  0xf1   : > { %p4154_p12 = pnand %p4153_p9, %p4147_p5 }
  0xf3   : > { %4157 = shalt.err (!%p4154_p12)
}
  0xf4   : > { %3797 = dma.hbm_to_vmem [thread:$0]  (!%p4635_p13), %s5432_s30, 128, %s621_s16, [#allocation12]  }
  0xf5   : > { %s4158_s25 = scalar_lea.hbm %s5345_s7, 512 }
  0xf6   : > { %p4159_p2 = scmp.ne.s32.totalorder %s5345_s7, %s4158_s25  ;;  %p4165_p10 = scmp.lt.u32.totalorder %s4158_s25, %s5345_s7 }
  0xf8   : > { %p4161_p4 = pnand %p4159_p2, %p4649_p1 }
  0xfa   : > { %p4162_p8 = pneg %p4161_p4 }
  0xfc   : > { %p4167_p11 = pnand %p4165_p10, %p4162_p8 }
  0xfe   : > { %4170 = shalt.err (!%p4167_p11)
}
  0xff   : > { %s4171_s21 = scalar_lea.vmem %s647_s28, 512  ;;  %p4179_p6 = scmp.lt.s32.totalorder %s647_s28, %s647_s28 }
 0x100   : > { %p4172_p0 = scmp.ne.s32.totalorder %s647_s28, %s4171_s21  ;;  %p4180_p7 = scmp.lt.s32.totalorder %s4171_s21, %s4171_s21 }
 0x102   : > { %p4174_p3 = pnand %p4172_p0, %p4649_p1  ;;  %p4181_p9 = por %p4180_p7, %p4179_p6 }
 0x104   : > { %p4175_p5 = pneg %p4174_p3 }
 0x106   : > { %p4182_p12 = pnand %p4181_p9, %p4175_p5 }
 0x108   : > { %4185 = shalt.err (!%p4182_p12)
}
 0x109   : > { %3803 = dma.hbm_to_vmem [thread:$0]  (!%p4635_p13), %s5345_s7, 512, %s647_s28, [#allocation15], %s5427_s17, %s5427_s17, %s5426_s11  }
 0x10a   : > { %s4442_s29 = smov [#allocation19]   ;;  %s4443_s10 = smov [#allocation20]  }
 0x10b   : > { %s681_s6 = sshll.u32 %s4442_s29, 4  ;;  %s697_s0 = sshll.u32 %s4443_s10, 4  ;;  %s682_s6 = int_to_ptr.vmem [resolvable:$true] %s681_s6  ;;  %s698_s0 = int_to_ptr.vmem [resolvable:$true] %s697_s0 }
 0x10c   : > { %s4186_s9 = scalar_lea.hbm %s5350_s12, 512 }
 0x10d   : > { %p4187_p2 = scmp.ne.s32.totalorder %s5350_s12, %s4186_s9  ;;  %p4193_p10 = scmp.lt.u32.totalorder %s4186_s9, %s5350_s12 }
 0x10f   : > { %p4189_p4 = pnand %p4187_p2, %p4649_p1 }
 0x111   : > { %p4190_p8 = pneg %p4189_p4 }
 0x113   : > { %p4195_p11 = pnand %p4193_p10, %p4190_p8 }
 0x115   : > { %4198 = shalt.err (!%p4195_p11)
}
 0x116   : > { %s4199_s28 = scalar_lea.vmem %s682_s6, 512  ;;  %p4207_p6 = scmp.lt.s32.totalorder %s682_s6, %s682_s6 }
 0x117   : > { %p4200_p0 = scmp.ne.s32.totalorder %s682_s6, %s4199_s28  ;;  %p4208_p7 = scmp.lt.s32.totalorder %s4199_s28, %s4199_s28 }
 0x119   : > { %p4202_p3 = pnand %p4200_p0, %p4649_p1  ;;  %p4209_p9 = por %p4208_p7, %p4207_p6 }
 0x11b   : > { %p4203_p5 = pneg %p4202_p3 }
 0x11d   : > { %p4210_p12 = pnand %p4209_p9, %p4203_p5 }
 0x11f   : > { %4213 = shalt.err (!%p4210_p12)
}
 0x120   : > { %3809 = dma.hbm_to_vmem [thread:$0]  (!%p4635_p13), %s5350_s12, 512, %s682_s6, [#allocation18], %s5427_s17, %s5427_s17, %s5426_s11  }
 0x121   : > { %s4214_s3 = scalar_lea.hbm %s5352_s14, 512 }
 0x122   : > { %p4215_p2 = scmp.ne.s32.totalorder %s5352_s14, %s4214_s3  ;;  %p4221_p10 = scmp.lt.u32.totalorder %s4214_s3, %s5352_s14 }
 0x124   : > { %p4217_p4 = pnand %p4215_p2, %p4649_p1 }
 0x126   : > { %p4218_p8 = pneg %p4217_p4 }
 0x128   : > { %p4223_p11 = pnand %p4221_p10, %p4218_p8 }
 0x12a   : > { %4226 = shalt.err (!%p4223_p11)
}
 0x12b   : > { %s4227_s16 = scalar_lea.vmem %s698_s0, 512  ;;  %p4235_p6 = scmp.lt.s32.totalorder %s698_s0, %s698_s0 }
 0x12c   : > { %p4228_p0 = scmp.ne.s32.totalorder %s698_s0, %s4227_s16  ;;  %p4236_p7 = scmp.lt.s32.totalorder %s4227_s16, %s4227_s16 }
 0x12e   : > { %p4230_p3 = pnand %p4228_p0, %p4649_p1  ;;  %p4237_p9 = por %p4236_p7, %p4235_p6 }
 0x130   : > { %p4231_p5 = pneg %p4230_p3 }
 0x132   : > { %p4238_p12 = pnand %p4237_p9, %p4231_p5 }
 0x134   : > { %4241 = shalt.err (!%p4238_p12)
}
 0x135   : > { %3812 = dma.hbm_to_vmem [thread:$0]  (!%p4635_p13), %s5352_s14, 512, %s698_s0, [#allocation21], %s5427_s17, %s5427_s17, %s5426_s11  }
 0x136   : > { %p5433_p2 = scmp.ne.s32.totalorder %s5418_s1, 0 }
 0x137   : > { %p5434_p1 = scmp.ne.s32.totalorder (!%p5433_p2), %s5419_s19, 0 }
 0x138   : > { %719 = sbr.rel (%p5433_p2) target bundleno = 2638 (0xa4e), region = 88 }
 0x13f   : > { %4373 = dma.done.wait (%p5434_p1), [#allocation6], 1024  }
 0x140   : > { %4375 = vsyncadd (%p5434_p1), [#allocation6], 4294966272 }
 0x141   : > { %4377 = dma.done.wait (%p5434_p1), [#allocation9], 1152  }
 0x142   : > { %4379 = vsyncadd (%p5434_p1), [#allocation9], 4294966144 }
 0x143   : > { %4381 = dma.done.wait (%p5434_p1), [#allocation12], 256  }
 0x144   : > { %4383 = vsyncadd (%p5434_p1), [#allocation12], 4294967040 }
 0x145   : > { %4385 = dma.done.wait (%p5434_p1), [#allocation15], 768  }
 0x146   : > { %4387 = vsyncadd (%p5434_p1), [#allocation15], 4294966528 }
 0x147   : > { %4389 = dma.done.wait (%p5434_p1), [#allocation18], 1024  }
 0x148   : > { %4391 = vsyncadd (%p5434_p1), [#allocation18], 4294966272 }
 0x149   : > { %4393 = dma.done.wait (%p5434_p1), [#allocation21], 512  }
 0x14a   : > { %4395 = vsyncadd (%p5434_p1), [#allocation21], 4294966784  ;;  %s799_s1 = sand.u32 1, %s4414_s22   ;;  %p3423_p13 = scmp.ne.s32.totalorder %s4422_s24, 0 }
 0x14b   : > { %s4882_s27 = sshll.u32 %s799_s1, 3  ;;  %v3424_v0 = vld [vmem:[%s5343_s5] ss:$0 sm:$0xff] (!%p3423_p13)  ;;  %vm826_vm0 = vcmask (!%p3423_p13), 130048   ;;  %v828_v1 = vld [vmem:[#allocation10] sm:$0xff] (!%p3423_p13)  ;;  %vm829_vm1 = vcmask (!%p3423_p13), 64512  }
 0x14c   : > { %s801_s26 = scalar_lea.vmem [#allocation22], %s4882_s27  ;;  %813 = sbr.rel (%p3423_p13) target bundleno = 563 (0x233), region = 132  ;;  %827 = vst.msk [vmem:[#allocation2] sm:$0xff] (!%p3423_p13), %vm826_vm0, %v3424_v0  ;;  %v4444_v2 = vmov (!%p3423_p13), 0   ;;  %v840_v3 = vld [vmem:[#allocation20] sm:$0xff] (!%p3423_p13)  ;;  %v841_v4 = vld [vmem:[#allocation20 + $0x8] sm:$0xff] (!%p3423_p13) }
 0x14d   : > { %830 = vst.msk [vmem:[#allocation3] sm:$0xff] (!%p3423_p13), %vm829_vm1, %v828_v1  ;;  %831 = vst.msk [vmem:[#allocation23] sm:$0xff] (!%p3423_p13), %vm829_vm1, %v4444_v2  ;;  %v842_v5 = vld [vmem:[#allocation20 + $0x10] sm:$0xff] (!%p3423_p13)  ;;  %v3689_v6 = vpack.c.bf16 (!%p3423_p13), %v841_v4, %v840_v3  ;;  %v843_v7 = vld [vmem:[#allocation20 + $0x18] sm:$0xff] (!%p3423_p13)  ;;  %vm815_vm2 = vcmask (!%p3423_p13), 261120  }
 0x14e   : > { %v814_v8 = vld [vmem:[#allocation11] sm:$0xff] (!%p3423_p13)  ;;  %v817_v9 = vld [vmem:[#allocation13] sm:$0xff] (!%p3423_p13)  ;;  %v3693_v10 = vpack.c.bf16 (!%p3423_p13), %v843_v7, %v842_v5  ;;  %v832_v11 = vld [vmem:[#allocation8] sm:$0xff] (!%p3423_p13) }
 0x14f   : > { %816 = vst.msk [vmem:[#allocation25] sm:$0xff] (!%p3423_p13), %vm815_vm2, %v814_v8  ;;  %818 = vst.msk [vmem:[#allocation26] sm:$0xff] (!%p3423_p13), %vm815_vm2, %v817_v9  ;;  %3690 = vmatprep.subr.bf16.mxu0 (!%p3423_p13), %v3689_v6  ;;  %3724 = vmatprep.subr.bf16.mxu1 (!%p3423_p13), %v3689_v6  ;;  %v836_v12 = vld [vmem:[#allocation8 + $0x20] sm:$0xff] (!%p3423_p13)  ;;  %v833_v13 = vld [vmem:[#allocation8 + $0x8] sm:$0xff] (!%p3423_p13) }
 0x150   : > { %3692 = vmatpush3.bf16.msra.mxu0 (!%p3423_p13), %v3689_v6  ;;  %3726 = vmatpush3.bf16.msra.mxu1 (!%p3423_p13), %v3689_v6  ;;  %v837_v14 = vld [vmem:[#allocation8 + $0x28] sm:$0xff] (!%p3423_p13)  ;;  %v834_v15 = vld [vmem:[#allocation8 + $0x10] sm:$0xff] (!%p3423_p13)  ;;  %v835_v17 = vld [vmem:[#allocation8 + $0x18] sm:$0xff] (!%p3423_p13) }
 0x151   : > { %3694 = vmatprep.subr.bf16.mxu0 (!%p3423_p13), %v3693_v10  ;;  %3725 = vmatprep.subr.bf16.mxu1 (!%p3423_p13), %v3693_v10  ;;  %v838_v16 = vld [vmem:[#allocation8 + $0x30] sm:$0xff] (!%p3423_p13)  ;;  %v839_v18 = vld [vmem:[#allocation8 + $0x38] sm:$0xff] (!%p3423_p13) }
 0x152   : > { %3546 = vmatprep.mubr.msk.f32.mxu0 (!%p3423_p13), %vm815_vm2, %v832_v11  ;;  %3552 = vmatprep.mubr.msk.f32.mxu1 (!%p3423_p13), %vm815_vm2, %v836_v12  ;;  %v3425_v19 = vld [vmem:[%s5353_s15] ss:$0 sm:$0xff] (!%p3423_p13) }
 0x154   : > { %3696 = vmatpush3.bf16.msra.mxu0 %v3693_v10  ;;  %3727 = vmatpush3.bf16.msra.mxu1 %v3693_v10 }
 0x157   : > { %3547 = vmatmul.mubr.msk.f32.vlgmr.msra.gmra.mrb[0].mxu0 %vm815_vm2, %v833_v13  ;;  %3553 = vmatmul.mubr.msk.f32.vlgmr.msra.gmra.mrb[0].mxu1 %vm815_vm2, %v837_v14 }
 0x158   : > { %3549 = vmatprep.mubr.msk.f32.mxu0 %vm815_vm2, %v834_v15  ;;  %3555 = vmatprep.mubr.msk.f32.mxu1 %vm815_vm2, %v838_v16 }
 0x15b   : > { %3550 = vmatmul.mubr.msk.f32.gmra.mrb[2].mxu0 %vm815_vm2, %v835_v17  ;;  %3556 = vmatmul.mubr.msk.f32.gmra.mrb[2].mxu1 %vm815_vm2, %v839_v18 }
 0x22a   : > { %v3548_v20 = vpop.f32.mrb[0].mxu0  ;;  %v3554_v21 = vpop.f32.mrb[0].mxu1 }
 0x22b   : > { %v947_v22 = vadd.f32 %v3548_v20, %v3425_v19  ;;  %v967_v23 = vadd.f32 %v3554_v21, %v3425_v19  ;;  %v941_v24 = vpop.f32.mrb[1].mxu0  ;;  %v961_v25 = vpop.f32.mrb[1].mxu1 }
 0x22c   : > { %v942_v26 = vadd.f32 %v3425_v19, %v941_v24  ;;  %v962_v27 = vadd.f32 %v3425_v19, %v961_v25 }
 0x22d   : > { %981 = vst.msk [vmem:[#allocation4 + $0x8] sm:$0xff] %vm815_vm2, %v947_v22  ;;  %985 = vst.msk [vmem:[#allocation4 + $0x28] sm:$0xff] %vm815_vm2, %v967_v23 }
 0x22e   : > { %980 = vst.msk [vmem:[#allocation4] sm:$0xff] %vm815_vm2, %v942_v26  ;;  %984 = vst.msk [vmem:[#allocation4 + $0x20] sm:$0xff] %vm815_vm2, %v962_v27  ;;  %v3551_v28 = vpop.f32.mrb[2].mxu0  ;;  %v3557_v29 = vpop.f32.mrb[2].mxu1 }
 0x22f   : > { %v957_v30 = vadd.f32 %v3551_v28, %v3425_v19  ;;  %v977_v31 = vadd.f32 %v3557_v29, %v3425_v19  ;;  %v951_v32 = vpop.f32.mrb[3].mxu0  ;;  %v971_v33 = vpop.f32.mrb[3].mxu1 }
 0x230   : > { %v952_v34 = vadd.f32 %v3425_v19, %v951_v32  ;;  %v972_v35 = vadd.f32 %v3425_v19, %v971_v33 }
 0x231   : > { %983 = vst.msk [vmem:[#allocation4 + $0x18] sm:$0xff] %vm815_vm2, %v957_v30  ;;  %987 = vst.msk [vmem:[#allocation4 + $0x38] sm:$0xff] %vm815_vm2, %v977_v31 }
 0x232   : > { %982 = vst.msk [vmem:[#allocation4 + $0x10] sm:$0xff] %vm815_vm2, %v952_v34  ;;  %986 = vst.msk [vmem:[#allocation4 + $0x30] sm:$0xff] %vm815_vm2, %v972_v35 }
 0x233 PF: > { %v994_v36 = vld [vmem:[#allocation16] sm:$0xff]  ;;  %v995_v37 = vld [vmem:[#allocation16 + $0x8] sm:$0xff]  ;;  %v992_v38 = vld [vmem:[#allocation14] sm:$0xff]  ;;  %v4445_v39 = vmov 0.0|0.0   ;;  %vm4446_vm3 = vmmov 0   ;;  %v4447_v45 = vmov 0.0   ;;  %v1281_v18 = vlaneseq  ;;  %s2458_s6 = scvt.s32.f32 %s4422_s24 }
 0x234   : > { %3697 = vmatprep.subr.bf16.mxu0 %v4445_v39  ;;  %v3698_v40 = vpack.c.bf16 %v995_v37, %v994_v36  ;;  %3703 = vmatprep.subr.bf16.mxu1 %v4445_v39  ;;  %v993_v41 = vld [vmem:[#allocation14 + $0x8] sm:$0xff]  ;;  %v996_v42 = vld [vmem:[#allocation16 + $0x10] sm:$0xff]  ;;  %v990_v47 = vld [vmem:[#allocation2] sm:$0xff]  ;;  %vm1072_vm4 = vcmask 130048   ;;  %vm998_vm5 = vcmask 261120   ;;  %s4448_s10 = smov 64  }
 0x235   : > { %v997_v43 = vld [vmem:[#allocation16 + $0x18] sm:$0xff]  ;;  %v3704_v44 = vpack.c.bf16 %v993_v41, %v992_v38  ;;  %3573 = vmatprep.mubr.msk.f32.mxu1 %vm4446_vm3, %v4447_v45  ;;  %3566 = vmatprep.mubr.msk.f32.mxu0 %vm4446_vm3, %v4447_v45  ;;  %v3436_v52 = vld [vmem:[%s5346_s8] ss:$0 sm:$0xff]  ;;  %s4449_s25 = smov 32   ;;  %v1190_v4 = vld [vmem:[#allocation19] sm:$0xff]  ;;  %v4945_v20 = vshrl.u32 %v1281_v18, 7 }
 0x236   : > { %3699 = vmatpush3.bf16.msra.mxu0 %v3698_v40  ;;  %v3701_v46 = vpack.c.bf16 %v997_v43, %v996_v42  ;;  %v988_v48 = vld [vmem:[#allocation25] sm:$0xff]  ;;  %v989_v57 = vld [vmem:[#allocation26] sm:$0xff]  ;;  %v1191_v5 = vld [vmem:[#allocation19 + $0x8] sm:$0xff]  ;;  %v4450_v16 = vmov 1966171168   ;;  %s5435_s21 = sld [smem:[#allocation55_spill]] }
 0x237   : > { %3700 = vmatprep.subr.bf16.mxu0 %v4445_v39  ;;  %3705 = vmatpush3.bf16.msra.mxu1 %v3704_v44  ;;  %v1192_v6 = vld [vmem:[#allocation19 + $0x10] sm:$0xff]  ;;  %v3707_v7 = vpack.c.bf16 %v1191_v5, %v1190_v4  ;;  %v1193_v8 = vld [vmem:[#allocation19 + $0x18] sm:$0xff]  ;;  %v1279_v17 = vunpack.c.l.s4 %v4450_v16  ;;  %v3438_v21 = vld [vmem:[%s5351_s13] ss:$0 sm:$0xff]  ;;  %v4955_v28 = vsub.s32 0, %v4945_v20  ;;  %vm1464_vm6 = vcmask 1041409  }
 0x238   : > { %3706 = vmatprep.subr.bf16.mxu1 %v4445_v39  ;;  %v3710_v9 = vpack.c.bf16 %v1193_v8, %v1192_v6  ;;  %v1182_v11 = vld [vmem:[#allocation4] sm:$0xff]  ;;  %v4962_v37 = vld [vmem:[#allocation4 + $0x8] sm:$0xff]  ;;  %v4966_v42 = vld [vmem:[#allocation4 + $0x18] sm:$0xff]  ;;  %vm1466_vm7 = vcmask 1042434   ;;  %vm1468_vm8 = vcmask 1043459   ;;  %vm1470_vm9 = vcmask 1044484  }
 0x239   : > { %v1184_v15 = vld [vmem:[#allocation4 + $0x10] sm:$0xff]  ;;  %v1280_v19 = vunpack.c.0.s8 %v1279_v17  ;;  %v4968_v43 = vld [vmem:[#allocation4 + $0x20] sm:$0xff]  ;;  %vm1472_vm10 = vcmask 1045509   ;;  %vm1474_vm11 = vcmask 1046534   ;;  %vm1476_vm12 = vcmask 1047559   ;;  %s4452_s16 = smov 96  }
 0x23a   : > { %3702 = vmatpush3.bf16.msra.mxu0 %v3701_v46  ;;  %3574 = vmatmul.mubr.msk.f32.vlgmr.msra.gmra.mrb[0].mxu1 %vm1072_vm4, %v990_v47  ;;  %vm1480_vm14 = vcmask 64512   ;;  %s5438_s17 = sld [smem:[#allocation52_spill]]  ;;  %s5439_s3 = sld [smem:[#allocation41_spill]] }
 0x23b   : > { %3584 = vmatprep.mubr.msk.f32.mxu1 %vm4446_vm3, %v4447_v45  ;;  %3587 = vmatprep.subr.mxu0 %v4447_v45  ;;  %v4951_v22 = vsub.s32 %v1280_v19, %v4945_v20  ;;  %s4453_s9 = smov [#allocation23]   ;;  %s3462_s4 = sshll.u32 %s4422_s24, 7 }
 0x23c   : > { %3708 = vmatpush3.bf16.msra.mxu1 %v3707_v7  ;;  %s3170_s2 = sshll.u32 %s4453_s9, 4  ;;  %s3171_s2 = int_to_ptr.vmem [resolvable:$true] %s3170_s2 }
 0x23d   : > { %3567 = vmatmul.mubr.msk.f32.vlgmr.msra.gmra.mrb[0].mxu0 %vm998_vm5, %v988_v48  ;;  %3709 = vmatprep.subr.bf16.mxu1 %v4445_v39  ;;  %s4242_s11 = scalar_lea.vmem %s3171_s2, 128  ;;  %p4249_p0 = scmp.lt.s32.totalorder %s3171_s2, %s3171_s2 }
 0x23e   : > { %3589 = vmatprep.mubr.msk.f32.mxu0 %vm4446_vm3, %v4447_v45  ;;  %3588 = vmatpush3.msra.mxu0 %v1182_v11  ;;  %p4243_p4 = scmp.ne.s32.totalorder %s3171_s2, %s4242_s11  ;;  %p4250_p3 = scmp.lt.s32.totalorder %s4242_s11, %s4242_s11 }
 0x23f   : > { %3592 = vmatprep.subr.mxu0 %v4447_v45 }
 0x240   : > { %3711 = vmatpush3.bf16.msra.mxu1 %v3710_v9  ;;  %p5441_p8 = scmp.ne.s32.totalorder %s5439_s3, 0  ;;  %p4251_p5 = por %p4250_p3, %p4249_p0 }
 0x241   : > { %3597 = vmatprep.subr.mxu1 %v4447_v45 }
 0x242   : > { %p4244_p10 = pnand %p4243_p4, %p5441_p8 }
 0x244   : > { %p4245_p11 = pneg %p4244_p10 }
 0x246   : > { %p4252_p6 = pnand %p4251_p5, %p4245_p11 }
 0x30d   : > { %v1142_v49 = vpop.f32.mrb[0].mxu1 }
 0x30e   : > { %v3575_v50 = vpop.f32.mrb[1].mxu1 }
 0x310   : > { %v1068_v51 = vpop.f32.mrb[0].mxu0 }
 0x311   : > { %v1143_v53 = vadd.f32 %v1142_v49, %v1068_v51  ;;  %v3568_v54 = vpop.f32.mrb[1].mxu0  ;;  %v4972_v49 = vld [vmem:[#allocation4 + $0x28] sm:$0xff] }
 0x313   : > { %v1153_v55 = vadd.f32 %v3436_v52, %v1143_v53 }
 0x315   : > { %3918 = vtanh.f32 %v1153_v55  ;;  %v3437_v58 = vmul.f32 -1.442695, %v1153_v55 }
 0x317   : > { %3920 = vpow2.f32 %v3437_v58  ;;  %v4980_v58 = vld [vmem:[#allocation4 + $0x38] sm:$0xff] }
 0x31f   : > { %v3919_v56 = vpop.eup %3918 }
 0x320   : > { %1167 = vrot.lane.b32.xlu0 %v3919_v56, %s4448_s10 }
 0x321   : > { %v3921_v59 = vpop.eup %3920 }
 0x322   : > { %v1157_v60 = vadd.f32 1.0, %v3921_v59 }
 0x324   : > { %1162 = vrot.lane.b32.xlu0 %v989_v57, %s4449_s25  ;;  %3922 = vrcp.f32 %v1157_v60 }
 0x32e   : > { %v3923_v61 = vpop.eup %3922 }
 0x392   : > { %v1168_v62 = vpop.permute.xlu0 %1167 }
 0x393   : > { %v1170_v63 = vmul.f32 %v3923_v61, %v1168_v62 }
 0x395   : > { %1172 = vrot.lane.b32.xlu1 %v1170_v63, %s4449_s25 }
 0x396   : > { %v1163_v0 = vpop.permute.xlu0 %1162 }
 0x397   : > { %v1165_v1 = vmul.f32 %v3923_v61, %v1163_v0  ;;  %v3440_v0 = vld [vmem:[%s5435_s21] ss:$0 sm:$0xff] }
 0x407   : > { %v1173_v2 = vpop.permute.xlu1 %1172 }
 0x408   : > { %v4930_v3 = vadd.f32 %v1173_v2, %v1165_v1 }
 0x40a   : > { %3924 = vtanh.f32 %v4930_v3 }
 0x414   : > { %v3925_v10 = vpop.eup %3924 }
 0x415   : > { %1178 = vrot.lane.b32.xlu1 %v3925_v10, %s4448_s10 }
 0x487   : > { %v1179_v12 = vpop.permute.xlu1 %1178 }
 0x488   : > { %v1181_v13 = vmul.f32 %v3923_v61, %v1179_v12  ;;  %v4984_v61 = vld [vmem:[#allocation4 + $0x30] sm:$0xff] }
 0x48a   : > { %1202 = vrot.lane.b32.xlu0 %v1181_v13, %s4449_s25 }
 0x4fc   : > { %v4937_v14 = vpop.permute.xlu0 %1202 }
 0x4fd   : > { %3585 = vmatmul.mubr.msk.f32.vlgmr.msra.gmra.mrb[2].mxu1 %vm998_vm5, %v4937_v14 }
 0x4fe   : > { %3598 = vmatpush3.msra.mxu1 %v1184_v15  ;;  %3599 = vmatprep.mubr.msk.f32.mxu1 %vm4446_vm3, %v4447_v45 }
 0x4ff   : > { %3607 = vmatprep.subr.mxu1 %v4447_v45 }
 0x5d0   : > { %v1272_v23 = vpop.f32.mrb[2].mxu1 }
 0x5d1   : > { %v1273_v24 = vadd.f32 %v3438_v21, %v1272_v23  ;;  %v3586_v25 = vpop.f32.mrb[3].mxu1 }
 0x5d3   : > { %v1277_v26 = vcombine.high %v1273_v24, %v1273_v24  ;;  %v1284_v27 = vrot.slane %v1273_v24, %v4951_v22 }
 0x5d5   : > { %v1291_v29 = vrot.slane %v1277_v26, %v4951_v22  ;;  %v1292_v30 = vcombine.high %v1284_v27, %v1284_v27  ;;  %v1300_v31 = vrot.slane %v1284_v27, %v4951_v22 }
 0x5d7   : > { %v1293_v32 = vcombine.high %v1291_v29, %v1291_v29  ;;  %v1307_v33 = vrot.slane %v1291_v29, %v4951_v22  ;;  %v1314_v34 = vrot.slane %v1292_v30, %v4951_v22  ;;  %v1322_v35 = vcombine.high %v1300_v31, %v1300_v31 }
 0x5d8   : > { %v1329_v36 = vrot.slane %v1300_v31, %v4955_v28  ;;  %v5000_v31 = vand.u32 127, %v1281_v18 }
 0x5d9   : > { %v1321_v38 = vrot.slane %v1293_v32, %v4951_v22  ;;  %v1324_v40 = vcombine.high %v1314_v34, %v1314_v34  ;;  %v1333_v41 = vrot.slane %v1314_v34, %v4955_v28  ;;  %v1323_v44 = vcombine.high %v1307_v33, %v1307_v33 }
 0x5da   : > { %v1337_v46 = vrot.slane %v1322_v35, %v4955_v28  ;;  %v1345_v47 = vrot.slane %v1307_v33, %v4955_v28  ;;  %v1366_v48 = vadd.f32 %v1329_v36, %v1182_v11  ;;  %v5004_v33 = vsub.s32 %v5000_v31, %v4945_v20 }
 0x5db   : > { %v1325_v50 = vcombine.high %v1321_v38, %v1321_v38  ;;  %v1341_v51 = vrot.slane %v1324_v40, %v4955_v28  ;;  %v1349_v52 = vrot.slane %v1321_v38, %v4955_v28  ;;  %v1367_v53 = vadd.f32 %v1333_v41, %v4962_v37 }
 0x5dc   : > { %v1368_v54 = vadd.f32 %v1337_v46, %v1184_v15  ;;  %3926 = vtanh.f32 %v1366_v48  ;;  %v1370_v57 = vadd.f32 %v1345_v47, %v4968_v43  ;;  %v1353_v59 = vrot.slane %v1323_v44, %v4955_v28 }
 0x5dd   : > { %v1357_v55 = vrot.slane %v1325_v50, %v4955_v28  ;;  %v1369_v56 = vadd.f32 %v1341_v51, %v4966_v42  ;;  %v1371_v60 = vadd.f32 %v1349_v52, %v4972_v49  ;;  %3928 = vtanh.f32 %v1367_v53 }
 0x5de   : > { %3930 = vtanh.f32 %v1368_v54  ;;  %v1372_v63 = vadd.f32 %v1353_v59, %v4984_v61  ;;  %v5019_v54 = vld [vmem:[#allocation3] sm:$0xff] }
 0x5df   : > { %3932 = vtanh.f32 %v1369_v56  ;;  %v1373_v62 = vadd.f32 %v1357_v55, %v4980_v58  ;;  %vm1421_vm13 = vcmp.eq.f32.partialorder %v5019_v54, 0.0 }
 0x5e0   : > { %3934 = vtanh.f32 %v1370_v57 }
 0x5e1   : > { %3936 = vtanh.f32 %v1371_v60 }
 0x5e2   : > { %3938 = vtanh.f32 %v1373_v62 }
 0x5e3   : > { %3940 = vtanh.f32 %v1372_v63 }
 0x5e6   : > { %v3927_v1 = vpop.eup %3926 }
 0x5e7   : > { %v1389_v2 = vmul.f32 %v3927_v1, %v3440_v0  ;;  %v3929_v4 = vpop.eup %3928 }
 0x5e8   : > { %v3931_v5 = vpop.eup %3930  ;;  %v1390_v7 = vmul.f32 %v3929_v4, %v3440_v0  ;;  %v1509_v4 = vsub.s32 1, %v4945_v20 }
 0x5e9   : > { %v1397_v6 = vsel %vm998_vm5, %v1389_v2, 0.0  ;;  %v3933_v8 = vpop.eup %3932  ;;  %v1391_v12 = vmul.f32 %v3931_v5, %v3440_v0  ;;  %v4451_v2 = vmov 0   ;;  %v1513_v5 = vsub.s32 2, %v4945_v20 }
 0x5ea   : > { %1398 = vadd.xlane.f32.xlu1 %v1397_v6  ;;  %v3935_v9 = vpop.eup %3934  ;;  %v1400_v10 = vsel %vm998_vm5, %v1390_v7, 0.0  ;;  %v1392_v11 = vmul.f32 %v3933_v8, %v3440_v0  ;;  %3917 = vset.pattern.permute.xlu0 %v4451_v2  ;;  %v1517_v8 = vsub.s32 3, %v4945_v20 }
 0x5eb   : > { %v3937_v13 = vpop.eup %3936  ;;  %1401 = vadd.xlane.f32.xlu0 %v1400_v10  ;;  %v1403_v19 = vsel %vm998_vm5, %v1391_v12, 0.0  ;;  %v1393_v21 = vmul.f32 %v3935_v9, %v3440_v0  ;;  %3916 = vset.pattern.permute.xlu1 %v4451_v2 }
 0x5ec   : > { %v1406_v15 = vsel %vm998_vm5, %v1392_v11, 0.0  ;;  %v1394_v16 = vmul.f32 %v3937_v13, %v3440_v0  ;;  %v3939_v17 = vpop.eup %3938 }
 0x5ed   : > { %v3941_v23 = vpop.eup %3940  ;;  %v1396_v25 = vmul.f32 %v3939_v17, %v3440_v0  ;;  %v1409_v26 = vsel %vm998_vm5, %v1393_v21, 0.0  ;;  %v1521_v17 = vsub.s32 4, %v4945_v20 }
 0x5ee   : > { %1407 = vadd.xlane.f32.xlu1 %v1406_v15  ;;  %v1412_v24 = vsel %vm998_vm5, %v1394_v16, 0.0  ;;  %v1395_v27 = vmul.f32 %v3941_v23, %v3440_v0  ;;  %v1525_v23 = vsub.s32 5, %v4945_v20 }
 0x5ef   : > { %1404 = vadd.xlane.f32.xlu0 %v1403_v19  ;;  %v1418_v29 = vsel %vm998_vm5, %v1396_v25, 0.0 }
 0x5f0   : > { %v1415_v30 = vsel %vm998_vm5, %v1395_v27, 0.0  ;;  %v1529_v27 = vsub.s32 6, %v4945_v20 }
 0x5f2   : > { %1413 = vadd.xlane.f32.xlu1 %v1412_v24 }
 0x5f3   : > { %1410 = vadd.xlane.f32.xlu0 %v1409_v26 }
 0x5f6   : > { %1419 = vadd.xlane.f32.xlu1 %v1418_v29 }
 0x5f7   : > { %1416 = vadd.xlane.f32.xlu0 %v1415_v30 }
 0x677   : > { %v1399_v32 = vpop.xlane.xlu1 %1398 }
 0x678   : > { %v1402_v34 = vpop.xlane.xlu0 %1401  ;;  %v1435_v38 = vrot.slane %v1399_v32, %v5004_v33 }
 0x679   : > { %v1439_v35 = vrot.slane %v1402_v34, %v5004_v33 }
 0x67b   : > { %v1408_v36 = vpop.xlane.xlu1 %1407  ;;  %v1465_v44 = vsel %vm1464_vm6, %v1439_v35, %v1435_v38 }
 0x67c   : > { %v1405_v40 = vpop.xlane.xlu0 %1404  ;;  %v1447_v47 = vrot.slane %v1408_v36, %v5004_v33 }
 0x67d   : > { %v1443_v41 = vrot.slane %v1405_v40, %v5004_v33 }
 0x67f   : > { %v5010_v18 = vpop.xlane.xlu1 %1413  ;;  %v1467_v46 = vsel %vm1466_vm7, %v1443_v41, %v1465_v44 }
 0x680   : > { %v1411_v48 = vpop.xlane.xlu0 %1410  ;;  %v1469_v51 = vsel %vm1468_vm8, %v1447_v47, %v1467_v46  ;;  %v1455_v55 = vrot.slane %v5010_v18, %v5004_v33 }
 0x681   : > { %v1451_v50 = vrot.slane %v1411_v48, %v5004_v33 }
 0x683   : > { %v1471_v52 = vsel %vm1470_vm9, %v1451_v50, %v1469_v51  ;;  %v5017_v53 = vpop.xlane.xlu1 %1419 }
 0x684   : > { %v1417_v56 = vpop.xlane.xlu0 %1416  ;;  %v1463_v59 = vrot.slane %v5017_v53, %v5004_v33  ;;  %v1473_v60 = vsel %vm1472_vm10, %v1455_v55, %v1471_v52 }
 0x685   : > { %v1459_v57 = vrot.slane %v1417_v56, %v5004_v33 }
 0x687   : > { %v1475_v62 = vsel %vm1474_vm11, %v1459_v57, %v1473_v60 }
 0x688   : > { %v1477_v63 = vsel %vm1476_vm12, %v1463_v59, %v1475_v62  ;;  %v2454_v62 = vld [vmem:[#allocation10] sm:$0xff] }
 0x689   : > { %v1479_v0 = vsel %vm1421_vm13, -inf, %v1477_v63  ;;  %v2455_v63 = vsel %vm1480_vm14, %v2454_v62, 0.0 }
 0x68a   : > { %v1481_v1 = vsel %vm1480_vm14, %v1479_v0, -inf  ;;  %3106 = vst.msk [vmem:[%s801_s26] sm:$0xff] %vm1480_vm14, %v1479_v0 }
 0x68b   : > { %1482 = vmax.xlane.f32.xlu0 %v1481_v1 }
 0x718   : > { %v1483_v6 = vpop.xlane.xlu0 %1482 }
 0x719   : > { %v1501_v7 = vmax.f32 %v1483_v6, -1e+30  ;;  %vm1484_vm15 = vcmp.eq.f32.partialorder %v1479_v0, %v1483_v6 }
 0x71a   : > { %v1485_v55 = vsel %vm1484_vm15, %v5000_v31, 8 }
 0x71b   : > { %v1510_v9 = vrot.slane %v1501_v7, %v1509_v4  ;;  %v1506_v10 = vrot.slane %v1501_v7, %v4955_v28  ;;  %v1514_v11 = vrot.slane %v1501_v7, %v1513_v5  ;;  %v1518_v16 = vrot.slane %v1501_v7, %v1517_v8 }
 0x71c   : > { %v1522_v26 = vrot.slane %v1501_v7, %v1521_v17  ;;  %v1526_v30 = vrot.slane %v1501_v7, %v1525_v23  ;;  %v1530_v38 = vrot.slane %v1501_v7, %v1529_v27  ;;  %v1486_v57 = vsel %vm1480_vm14, %v1485_v55, 2147483647 }
 0x71d   : > { %v1544_v12 = vsub.f32 %v1402_v34, %v1510_v9  ;;  %v1543_v13 = vsub.f32 %v1399_v32, %v1506_v10  ;;  %v1545_v15 = vsub.f32 %v1405_v40, %v1514_v11  ;;  %v1546_v25 = vsub.f32 %v1408_v36, %v1518_v16 }
 0x71e   : > { %v1547_v29 = vsub.f32 %v1411_v48, %v1522_v26  ;;  %v1533_v32 = vsub.s32 7, %v4945_v20  ;;  %v1548_v35 = vsub.f32 %v5010_v18, %v1526_v30  ;;  %v1549_v44 = vsub.f32 %v1417_v56, %v1530_v38 }
 0x71f   : > { %v1553_v19 = vmul.f32 1.442695, %v1544_v12  ;;  %v1551_v21 = vmul.f32 1.442695, %v1543_v13  ;;  %v1555_v24 = vmul.f32 1.442695, %v1545_v15 }
 0x720   : > { %v1557_v28 = vmul.f32 1.442695, %v1546_v25  ;;  %v1559_v34 = vmul.f32 1.442695, %v1547_v29  ;;  %v1561_v36 = vmul.f32 1.442695, %v1548_v35  ;;  %v1534_v46 = vrot.slane %v1501_v7, %v1533_v32 }
 0x721   : > { %3942 = vpow2.f32 %v1553_v19  ;;  %v1563_v48 = vmul.f32 1.442695, %v1549_v44  ;;  %v1488_v60 = vshra.s32 %v1486_v57, 16  ;;  %v1487_v32 = vand.u32 65535, %v1486_v57 }
 0x722   : > { %3944 = vpow2.f32 %v1551_v21  ;;  %v1550_v50 = vsub.f32 %v5017_v53, %v1534_v46 }
 0x723   : > { %3946 = vpow2.f32 %v1555_v24  ;;  %v1490_v53 = vcvt.s32.f32 %v1488_v60  ;;  %v1489_v35 = vcvt.s32.f32 %v1487_v32  ;;  %v2275_v32 = vld [vmem:[%s5438_s17 + $0x10] sm:$0xff] }
 0x724   : > { %3948 = vpow2.f32 %v1557_v28  ;;  %v1565_v51 = vmul.f32 1.442695, %v1550_v50 }
 0x725   : > { %3950 = vpow2.f32 %v1559_v34 }
 0x726   : > { %3952 = vpow2.f32 %v1561_v36 }
 0x727   : > { %3954 = vpow2.f32 %v1563_v48 }
 0x728   : > { %3956 = vpow2.f32 %v1565_v51 }
 0x72b   : > { %v3943_v40 = vpop.eup %3942 }
 0x72c   : > { %v3945_v41 = vpop.eup %3944  ;;  %1579 = vperm.xlu0 %3917, %v3943_v40  }
 0x72d   : > { %1576 = vperm.xlu1 %3916, %v3945_v41   ;;  %v3947_v47 = vpop.eup %3946  ;;  %v2459_v41 = vstv %s2458_s6  ;;  %s5440_s6 = sld [smem:[#allocation56_spill]] }
 0x72e   : > { %v3949_v20 = vpop.eup %3948 }
 0x72f   : > { %v3951_v18 = vpop.eup %3950 }
 0x730   : > { %v3953_v52 = vpop.eup %3952 }
 0x731   : > { %1582 = vperm.xlu1 %3916, %v3947_v47   ;;  %v3955_v56 = vpop.eup %3954 }
 0x732   : > { %v3957_v59 = vpop.eup %3956 }
 0x733   : > { %s5214_s28 = scalar_lea.hbm %s5440_s6, %s3462_s4 }
 0x735   : > { %1585 = vperm.xlu1 %3916, %v3949_v20  }
 0x739   : > { %1588 = vperm.xlu1 %3916, %v3951_v18   ;;  %v2464_v18 = vstv %s4422_s24 }
 0x73d   : > { %1591 = vperm.xlu1 %3916, %v3953_v52  }
 0x741   : > { %1594 = vperm.xlu1 %3916, %v3955_v56  }
 0x745   : > { %1597 = vperm.xlu1 %3916, %v3957_v59  }
 0x74b   : > { %1491 = vmin.xlane.f32.xlu0 %v1490_v53 }
 0x74f   : > { %2456 = vadd.xlane.f32.xlu0 %v2455_v63 }
 0x7ab   : > { %v1580_v6 = vpop.permute.xlu0 %1579 }
 0x7ac   : > { %v1577_v1 = vpop.permute.xlu1 %1576  ;;  %v1606_v8 = vrot.slane %v1580_v6, %v5004_v33  ;;  %v2277_v6 = vld [vmem:[#allocation17] sm:$0xff] }
 0x7ad   : > { %v1602_v9 = vrot.slane %v1577_v1, %v5004_v33 }
 0x7af   : > { %v1631_v15 = vsel %vm1464_vm6, %v1606_v8, %v1602_v9 }
 0x7b0   : > { %v1583_v4 = vpop.permute.xlu1 %1582 }
 0x7b1   : > { %v1610_v10 = vrot.slane %v1583_v4, %v5004_v33  ;;  %v3108_v4 = vld [vmem:[#allocation23] sm:$0xff] }
 0x7b3   : > { %v1632_v17 = vsel %vm1466_vm7, %v1610_v10, %v1631_v15 }
 0x7b4   : > { %v1586_v5 = vpop.permute.xlu1 %1585 }
 0x7b5   : > { %v1614_v11 = vrot.slane %v1586_v5, %v5004_v33 }
 0x7b7   : > { %v1633_v21 = vsel %vm1468_vm8, %v1614_v11, %v1632_v17  ;;  %v2522_v17 = vld [vmem:[#allocation5] sm:$0xff] }
 0x7b8   : > { %v1589_v0 = vpop.permute.xlu1 %1588 }
 0x7b9   : > { %v1618_v12 = vrot.slane %v1589_v0, %v5004_v33 }
 0x7bb   : > { %v1634_v23 = vsel %vm1470_vm9, %v1618_v12, %v1633_v21  ;;  %v2279_v12 = vld [vmem:[#allocation17 + $0x10] sm:$0xff]  ;;  %v2524_v21 = vld [vmem:[#allocation5 + $0x10] sm:$0xff] }
 0x7bc   : > { %v1592_v7 = vpop.permute.xlu1 %1591 }
 0x7bd   : > { %v1622_v16 = vrot.slane %v1592_v7, %v5004_v33  ;;  %v2278_v7 = vld [vmem:[#allocation17 + $0x8] sm:$0xff] }
 0x7bf   : > { %v1635_v25 = vsel %vm1472_vm10, %v1622_v16, %v1634_v23 }
 0x7c0   : > { %v1595_v13 = vpop.permute.xlu1 %1594 }
 0x7c1   : > { %v1626_v19 = vrot.slane %v1595_v13, %v5004_v33  ;;  %v2280_v13 = vld [vmem:[#allocation17 + $0x18] sm:$0xff] }
 0x7c2   : > { %v3716_v16 = vpack.c.bf16 %v2280_v13, %v2279_v12  ;;  %v2527_v13 = vld [vmem:[#allocation5 + $0x28] sm:$0xff] }
 0x7c3   : > { %v1636_v27 = vsel %vm1474_vm11, %v1626_v19, %v1635_v25 }
 0x7c4   : > { %v1598_v24 = vpop.permute.xlu1 %1597 }
 0x7c5   : > { %v1630_v26 = vrot.slane %v1598_v24, %v5004_v33  ;;  %v2526_v24 = vld [vmem:[#allocation5 + $0x20] sm:$0xff] }
 0x7c7   : > { %v1637_v28 = vsel %vm1476_vm12, %v1630_v26, %v1636_v27  ;;  %v2528_v26 = vld [vmem:[#allocation5 + $0x30] sm:$0xff] }
 0x7c8   : > { %v1639_v29 = vsel %vm1421_vm13, 0.0, %v1637_v28  ;;  %vm5088_vm13 = vcmp.eq.s32.totalorder %v5000_v31, %v2464_v18  ;;  %v2273_v28 = vld [vmem:[%s5438_s17] sm:$0xff] }
 0x7c9   : > { %v1640_v30 = vsel %vm1480_vm14, %v1639_v29, 0.0 }
 0x7ca   : > { %1641 = vadd.xlane.f32.xlu1 %v1640_v30 }
 0x7d8   : > { %v1492_v34 = vpop.xlane.xlu0 %1491 }
 0x7d9   : > { %vm1493_vm0 = vcmp.eq.f32.partialorder %v1490_v53, %v1492_v34  ;;  %v1498_v47 = vcvt.f32.s32 %v1492_v34  ;;  %v2276_v34 = vld [vmem:[%s5438_s17 + $0x18] sm:$0xff] }
 0x7da   : > { %v1494_v38 = vsel %vm1493_vm0, %v1489_v35, inf  ;;  %v3722_v35 = vpack.c.bf16 %v2276_v34, %v2275_v32 }
 0x7db   : > { %1495 = vmin.xlane.f32.xlu1 %v1494_v38  ;;  %v1499_v52 = vshll.u32 %v1498_v47, 16 }
 0x7dc   : > { %v2457_v36 = vpop.xlane.xlu0 %2456 }
 0x7dd   : > { %vm2460_vm2 = vcmp.gt.f32.partialorder %v2457_v36, %v2459_v41 }
 0x7de   : > { %v2461_v46 = vsel %vm2460_vm2, 1, %v4451_v2 }
 0x7df   : > { %v2463_v20 = vsub.s32 1, %v2461_v46 }
 0x7e1   : > { %v2465_v59 = vmul.u32 %v2464_v18, %v2463_v20 }
 0x7ec   : > { %3113 = vrot.lane.b32.xlu1 %v4930_v3, %s4452_s16 }
 0x857   : > { %v1642_v33 = vpop.xlane.xlu1 %1641 }
 0x858   : > { %vm1643_vm1 = vcmp.eq.f32.partialorder %v1642_v33, 0.0 }
 0x859   : > { %v1644_v40 = vsel %vm1643_vm1, 1.0, %v1642_v33 }
 0x85a   : > { %3958 = vrcp.f32 %v1644_v40 }
 0x864   : > { %v3959_v44 = vpop.eup %3958 }
 0x865   : > { %v1646_v48 = vmul.f32 %v3959_v44, %v1639_v29  ;;  %v2274_v29 = vld [vmem:[%s5438_s17 + $0x8] sm:$0xff] }
 0x866   : > { %v3719_v30 = vpack.c.bf16 %v2274_v29, %v2273_v28 }
 0x867   : > { %v1648_v50 = vcombine.high %v1646_v48, %v1646_v48  ;;  %v1655_v51 = vrot.slane %v1646_v48, %v4951_v22 }
 0x868   : > { %v1496_v3 = vpop.xlane.xlu1 %1495 }
 0x869   : > { %v1497_v55 = vcvt.f32.s32 %v1496_v3  ;;  %v1671_v56 = vrot.slane %v1655_v51, %v4951_v22  ;;  %v1663_v57 = vcombine.high %v1655_v51, %v1655_v51  ;;  %v1662_v2 = vrot.slane %v1648_v50, %v4951_v22 }
 0x86b   : > { %v1500_v60 = vadd.s32 %v1499_v52, %v1497_v55  ;;  %3590 = vmatmul.mubr.msk.f32.vlgmr.msra.gmra.mrb[2].mxu0 %vm1480_vm14, %v1671_v56  ;;  %v1693_v53 = vcombine.high %v1671_v56, %v1671_v56  ;;  %v1685_v1 = vrot.slane %v1663_v57, %v4951_v22  ;;  %v1678_v0 = vrot.slane %v1662_v2, %v4951_v22 }
 0x86c   : > { %3593 = vmatpush3.msra.mxu0 %v4962_v37  ;;  %v3114_v62 = vpop.permute.xlu1 %3113  ;;  %3594 = vmatprep.mubr.msk.f32.mxu0 %vm4446_vm3, %v4447_v45 }
 0x86d   : > { %v2462_v63 = vmul.u32 %v2461_v46, %v1500_v60  ;;  %3600 = vmatmul.mubr.msk.f32.vlgmr.msra.gmra.mrb[4].mxu1 %vm1480_vm14, %v1693_v53  ;;  %3116 = vst.msk [vmem:[#allocation26] sm:$0xff] %vm998_vm5, %v3114_v62  ;;  %3602 = vmatprep.subr.mxu0 %v4447_v45  ;;  %v1695_v8 = vcombine.high %v1685_v1, %v1685_v1 }
 0x86e   : > { %3608 = vmatpush3.msra.mxu1 %v4968_v43  ;;  %3609 = vmatprep.mubr.msk.f32.mxu1 %vm4446_vm3, %v4447_v45  ;;  %v1664_v43 = vcombine.high %v1662_v2, %v1662_v2 }
 0x86f   : > { %v2466_v5 = vadd.s32 %v2465_v59, %v2462_v63  ;;  %3595 = vmatmul.mubr.msk.f32.vlgmr.msra.gmra.mrb[4].mxu0 %vm1480_vm14, %v1685_v1  ;;  %3617 = vmatprep.subr.mxu1 %v4447_v45 }
 0x870   : > { %3603 = vmatpush3.msra.mxu0 %v4966_v42  ;;  %3604 = vmatprep.mubr.msk.f32.mxu0 %vm4446_vm3, %v4447_v45  ;;  %v3713_v42 = vpack.c.bf16 %v2278_v7, %v2277_v6  ;;  %v1692_v15 = vrot.slane %v1664_v43, %v4951_v22  ;;  %v2523_v7 = vld [vmem:[#allocation5 + $0x8] sm:$0xff] }
 0x871   : > { %vm2467_vm15 = vcmp.eq.s32.totalorder %v5000_v31, %v2466_v5  ;;  %3610 = vmatmul.mubr.msk.f32.vlgmr.msra.gmra.mrb[6].mxu1 %vm1480_vm14, %v1678_v0  ;;  %3612 = vmatprep.subr.mxu0 %v4447_v45  ;;  %v3109_v9 = vsel %vm5088_vm13, %v2466_v5, %v3108_v4  ;;  %v1694_v31 = vcombine.high %v1678_v0, %v1678_v0 }
 0x872   : > { %v3452_v10 = vsel %vm2467_vm15, 1.0, %v4447_v45  ;;  %3618 = vmatpush3.msra.mxu1 %v4984_v61  ;;  %3619 = vmatprep.mubr.msk.f32.mxu1 %vm4446_vm3, %v4447_v45  ;;  %3110 = vst.msk [vmem:[#allocation23] sm:$0xff] %vm1480_vm14, %v3109_v9 }
 0x873   : > { %v2470_v11 = vsub.f32 1.0, %v3452_v10  ;;  %3605 = vmatmul.mubr.msk.f32.vlgmr.msra.gmra.mrb[6].mxu0 %vm1480_vm14, %v1695_v8  ;;  %3712 = vmatprep.subr.bf16.mxu1 %v4445_v39 }
 0x874   : > { %3613 = vmatpush3.msra.mxu0 %v4972_v49  ;;  %3614 = vmatprep.mubr.msk.f32.mxu0 %vm4446_vm3, %v4447_v45  ;;  %v1696_v49 = vcombine.high %v1692_v15, %v1692_v15 }
 0x875   : > { %v2471_v61 = vmul.f32 %v2470_v11, %v5019_v54  ;;  %3620 = vmatmul.mubr.msk.f32.vlgmr.msra.gmra.mrb[8].mxu1 %vm1480_vm14, %v1694_v31  ;;  %3622 = vmatprep.subr.mxu0 %v4447_v45  ;;  %v5127_v54 = vrot.slane %v3452_v10, %v4951_v22 }
 0x876   : > { %3714 = vmatpush3.bf16.msra.mxu1 %v3713_v42  ;;  %3635 = vmatprep.mubr.msk.f32.mxu1 %vm4446_vm3, %v4447_v45  ;;  %v2525_v42 = vld [vmem:[#allocation5 + $0x18] sm:$0xff] }
 0x877   : > { %3141 = vst.msk [vmem:[#allocation3] sm:$0xff] %vm1480_vm14, %v2471_v61  ;;  %3615 = vmatmul.mubr.msk.f32.vlgmr.msra.gmra.mrb[8].mxu0 %vm1480_vm14, %v1692_v15  ;;  %3715 = vmatprep.subr.bf16.mxu1 %v4445_v39  ;;  %v2496_v19 = vrot.slane %v5127_v54, %v4951_v22  ;;  %v2488_v0 = vcombine.high %v5127_v54, %v5127_v54  ;;  %v2529_v54 = vld [vmem:[#allocation5 + $0x38] sm:$0xff] }
 0x878   : > { %3623 = vmatpush3.msra.mxu0 %v4980_v58  ;;  %3624 = vmatprep.mubr.msk.f32.mxu0 %vm4446_vm3, %v4447_v45  ;;  %v2473_v58 = vcombine.high %v3452_v10, %v3452_v10 }
 0x879   : > { %3718 = vmatprep.subr.bf16.mxu0 %v4445_v39  ;;  %v2510_v10 = vrot.slane %v2488_v0, %v4951_v22 }
 0x87a   : > { %3717 = vmatpush3.bf16.msra.mxu1 %v3716_v16  ;;  %v5144_v23 = vrot.slane %v2473_v58, %v4951_v22 }
 0x87b   : > { %3625 = vmatmul.mubr.msk.f32.vlgmr.msra.gmra.mrb[10].mxu0 %vm1480_vm14, %v1696_v49  ;;  %3649 = vmatprep.subr.mxu1 %v4447_v45  ;;  %v2520_v12 = vcombine.high %v2510_v10, %v2510_v10 }
 0x87c   : > { %3646 = vmatprep.mubr.msk.f32.mxu0 %vm4446_vm3, %v4447_v45  ;;  %v2503_v25 = vrot.slane %v5144_v23, %v4951_v22  ;;  %3720 = vmatpush3.bf16.msra.mxu0 %v3719_v30  ;;  %v2489_v61 = vcombine.high %v5144_v23, %v5144_v23 }
 0x87d   : > { %3636 = vmatmul.mubr.msk.f32.vlgmr.msra.gmra.mrb[10].mxu1 %vm998_vm5, %v4937_v14  ;;  %v2518_v14 = vcombine.high %v2496_v19, %v2496_v19  ;;  %3721 = vmatprep.subr.bf16.mxu0 %v4445_v39 }
 0x87e   : > { %3650 = vmatpush3.msra.mxu1 %v2522_v17  ;;  %3651 = vmatprep.mubr.msk.f32.mxu1 %vm4446_vm3, %v4447_v45  ;;  %v2519_v27 = vcombine.high %v2503_v25, %v2503_v25  ;;  %v2517_v49 = vrot.slane %v2489_v61, %v4951_v22 }
 0x87f   : > { %3659 = vmatprep.subr.mxu1 %v4447_v45 }
 0x880   : > { %3723 = vmatpush3.bf16.msra.mxu0 %v3722_v35 }
 0x881   : > { %3652 = vmatmul.mubr.msk.f32.vlgmr.msra.gmra.mrb[12].mxu1 %vm1480_vm14, %v2496_v19  ;;  %3654 = vmatprep.subr.mxu0 %v4447_v45  ;;  %v2521_v19 = vcombine.high %v2517_v49, %v2517_v49 }
 0x882   : > { %3660 = vmatpush3.msra.mxu1 %v2524_v21  ;;  %3661 = vmatprep.mubr.msk.f32.mxu1 %vm4446_vm3, %v4447_v45 }
 0x883   : > { %3669 = vmatprep.subr.mxu1 %v4447_v45 }
 0x885   : > { %3662 = vmatmul.mubr.msk.f32.vlgmr.msra.gmra.mrb[14].mxu1 %vm1480_vm14, %v2518_v14 }
 0x886   : > { %3670 = vmatpush3.msra.mxu1 %v2526_v24  ;;  %3671 = vmatprep.mubr.msk.f32.mxu1 %vm4446_vm3, %v4447_v45 }
 0x887   : > { %3679 = vmatprep.subr.mxu1 %v4447_v45 }
 0x889   : > { %3672 = vmatmul.mubr.msk.f32.vlgmr.msra.gmra.mrb[16].mxu1 %vm1480_vm14, %v2503_v25 }
 0x88a   : > { %3680 = vmatpush3.msra.mxu1 %v2528_v26  ;;  %3681 = vmatprep.mubr.msk.f32.mxu1 %vm4446_vm3, %v4447_v45 }
 0x88d   : > { %3682 = vmatmul.mubr.msk.f32.vlgmr.msra.gmra.mrb[18].mxu1 %vm1480_vm14, %v2519_v27 }
 0x93e   : > { %v1765_v38 = vpop.f32.mrb[2].mxu0 }
 0x93f   : > { %v3591_v33 = vpop.f32.mrb[3].mxu0 }
 0x940   : > { %v1909_v40 = vpop.f32.mrb[4].mxu1 }
 0x941   : > { %v3601_v41 = vpop.f32.mrb[5].mxu1  ;;  %v2361_v39 = vrot.slane %v1909_v40, 6 }
 0x942   : > { %v1837_v36 = vpop.f32.mrb[4].mxu0 }
 0x943   : > { %v2359_v44 = vrot.slane %v1837_v36, 7  ;;  %v3596_v46 = vpop.f32.mrb[5].mxu0 }
 0x944   : > { %v2053_v47 = vpop.f32.mrb[6].mxu1 }
 0x945   : > { %v2360_v48 = vsel %vm1464_vm6, %v2359_v44, %v1765_v38  ;;  %v3611_v50 = vpop.f32.mrb[7].mxu1  ;;  %v2365_v52 = vrot.slane %v2053_v47, 4 }
 0x946   : > { %v1981_v20 = vpop.f32.mrb[6].mxu0  ;;  %v2362_v51 = vsel %vm1466_vm7, %v2361_v39, %v2360_v48 }
 0x947   : > { %v2363_v18 = vrot.slane %v1981_v20, 5  ;;  %v3606_v3 = vpop.f32.mrb[7].mxu0 }
 0x948   : > { %v2197_v55 = vpop.f32.mrb[8].mxu1 }
 0x949   : > { %v2364_v56 = vsel %vm1468_vm8, %v2363_v18, %v2362_v51  ;;  %v3621_v57 = vpop.f32.mrb[9].mxu1  ;;  %v2369_v62 = vrot.slane %v2197_v55, 2 }
 0x94a   : > { %v2125_v59 = vpop.f32.mrb[8].mxu0  ;;  %v2366_v60 = vsel %vm1470_vm9, %v2365_v52, %v2364_v56 }
 0x94b   : > { %v2367_v53 = vrot.slane %v2125_v59, 3  ;;  %v3616_v2 = vpop.f32.mrb[9].mxu0 }
 0x94d   : > { %v2368_v63 = vsel %vm1472_vm10, %v2367_v53, %v2366_v60 }
 0x94e   : > { %v2269_v1 = vpop.f32.mrb[10].mxu0  ;;  %v2370_v37 = vsel %vm1474_vm11, %v2369_v62, %v2368_v63 }
 0x94f   : > { %v2371_v4 = vrot.slane %v2269_v1, 1  ;;  %v3626_v5 = vpop.f32.mrb[11].mxu0 }
 0x950   : > { %v5179_v6 = vpop.f32.mrb[10].mxu1 }
 0x951   : > { %v2372_v43 = vsel %vm1476_vm12, %v2371_v4, %v2370_v37  ;;  %v3637_v8 = vpop.f32.mrb[11].mxu1 }
 0x952   : > { %3647 = vmatmul.mubr.msk.f32.vlgmr.msra.gmra.mrb[12].mxu0 %vm998_vm5, %v2372_v43 }
 0x953   : > { %3655 = vmatpush3.msra.mxu0 %v2523_v7  ;;  %3656 = vmatprep.mubr.msk.f32.mxu0 %vm4446_vm3, %v4447_v45 }
 0x954   : > { %v5185_v9 = vpop.f32.mrb[12].mxu1  ;;  %3664 = vmatprep.subr.mxu0 %v4447_v45 }
 0x955   : > { %v3653_v11 = vpop.f32.mrb[13].mxu1 }
 0x956   : > { %3657 = vmatmul.mubr.msk.f32.vlgmr.msra.gmra.mrb[14].mxu0 %vm1480_vm14, %v2510_v10 }
 0x957   : > { %3665 = vmatpush3.msra.mxu0 %v2525_v42  ;;  %3666 = vmatprep.mubr.msk.f32.mxu0 %vm4446_vm3, %v4447_v45 }
 0x958   : > { %v5192_v31 = vpop.f32.mrb[14].mxu1  ;;  %3674 = vmatprep.subr.mxu0 %v4447_v45 }
 0x959   : > { %v3663_v15 = vpop.f32.mrb[15].mxu1 }
 0x95a   : > { %3667 = vmatmul.mubr.msk.f32.vlgmr.msra.gmra.mrb[16].mxu0 %vm1480_vm14, %v2520_v12 }
 0x95b   : > { %3675 = vmatpush3.msra.mxu0 %v2527_v13  ;;  %3676 = vmatprep.mubr.msk.f32.mxu0 %vm4446_vm3, %v4447_v45 }
 0x95c   : > { %v5200_v16 = vpop.f32.mrb[16].mxu1  ;;  %3684 = vmatprep.subr.mxu0 %v4447_v45 }
 0x95d   : > { %v3673_v17 = vpop.f32.mrb[17].mxu1 }
 0x95e   : > { %3677 = vmatmul.mubr.msk.f32.vlgmr.msra.gmra.mrb[18].mxu0 %vm1480_vm14, %v2517_v49 }
 0x95f   : > { %3685 = vmatpush3.msra.mxu0 %v2529_v54  ;;  %3686 = vmatprep.mubr.msk.f32.mxu0 %vm4446_vm3, %v4447_v45 }
 0x960   : > { %v5207_v58 = vpop.f32.mrb[18].mxu1 }
 0x961   : > { %v3683_v21 = vpop.f32.mrb[19].mxu1 }
 0x962   : > { %3687 = vmatmul.mubr.msk.f32.vlgmr.msra.gmra.mrb[20].mxu0 %vm1480_vm14, %v2521_v19 }
 0x963   : > { %4255 = shalt.err (!%p4252_p6)
}
 0x964   : > { %s5442_s23 = sld [smem:[#allocation57_spill]] }
 0x96a   : > { %s5443_s29 = smov %s5442_s23  ;;  %s4256_s24 = scalar_lea.hbm %s5442_s23, 128 }
 0x96b   : > { %p4257_p7 = scmp.ne.s32.totalorder %s5443_s29, %s4256_s24  ;;  %p4262_p2 = scmp.lt.u32.totalorder %s4256_s24, %s5443_s29 }
 0x96d   : > { %p4258_p9 = pnand %p4257_p7, %p5441_p8 }
 0x96f   : > { %p4259_p12 = pneg %p4258_p9 }
 0x971   : > { %p4264_p1 = pnand %p4262_p2, %p4259_p12 }
 0x973   : > { %4267 = shalt.err (!%p4264_p1)
}
 0x974   : > { %s5444_s11 = sld [smem:[#allocation43_spill]]  ;;  %s3157_s19 = sshll.u32 %s801_s26, 4  ;;  %s3158_s19 = int_to_ptr.vmem [resolvable:$true] %s3157_s19 }
 0x975   : > { %3770 = dma.vmem_to_hbm [thread:$0]  (%p5441_p8), %s3171_s2, 128, %s5443_s29, [#allocation24]  }
 0x976   : > { %s3143_s0 = scalar_lea.sflag [#allocation7], %s799_s1  ;;  %s4268_s23 = scalar_lea.vmem %s3158_s19, 128 }
 0x977   : > { %p4269_p13 = scmp.ne.s32.totalorder %s3158_s19, %s4268_s23  ;;  %s4454_s24 = smov [#allocation22]  }
 0x978   : > { %s4272_s10 = sshll.u32 %s4454_s24, 4  ;;  %s4273_s10 = int_to_ptr.vmem [resolvable:$false] %s4272_s10 }
 0x979   : > { %s4274_s25 = scalar_lea.vmem %s4273_s10, 256  ;;  %p4275_p0 = scmp.lt.s32.totalorder %s3158_s19, %s4273_s10 }
 0x97a   : > { %p5445_p4 = scmp.ne.s32.totalorder %s5444_s11, 0  ;;  %p4276_p3 = scmp.lt.s32.totalorder %s4274_s25, %s4268_s23 }
 0x97c   : > { %p4270_p10 = pnand %p4269_p13, %p5445_p4  ;;  %p4277_p5 = por %p4276_p3, %p4275_p0 }
 0x97e   : > { %p4271_p11 = pneg %p4270_p10 }
 0x980   : > { %p4278_p6 = pnand %p4277_p5, %p4271_p11 }
 0x982   : > { %4281 = shalt.err (!%p4278_p6)
}
 0x983   : > { %s4282_s1 = scalar_lea.hbm %s5214_s28, 128  ;;  %s4286_s2 = scalar_lea.hbm %s5440_s6, 1024 }
 0x984   : > { %p4283_p7 = scmp.ne.s32.totalorder %s5214_s28, %s4282_s1  ;;  %p4287_p2 = scmp.lt.u32.totalorder %s5214_s28, %s5440_s6 }
 0x985   : > { %p4288_p1 = scmp.lt.u32.totalorder %s4286_s2, %s4282_s1  ;;  %p4290_p10 = scmp.lt.u32.totalorder %s4282_s1, %s5214_s28 }
 0x986   : > { %p4284_p9 = pnand %p4283_p7, %p5445_p4 }
 0x987   : > { %p4289_p13 = por %p4288_p1, %p4287_p2 }
 0x988   : > { %p4285_p12 = pneg %p4284_p9 }
 0x989   : > { %p4291_p11 = por %p4290_p10, %p4289_p13 }
 0x98b   : > { %p4292_p0 = pnand %p4291_p11, %p4285_p12 }
 0x98d   : > { %4295 = shalt.err (!%p4292_p0)
}
 0x98e   : > { %3768 = dma.vmem_to_hbm [thread:$0]  (%p5445_p4), %s3158_s19, 128, %s5214_s28, %s3143_s0  }
 0x98f   : > { %s4455_s21 = smov [#allocation26]  }
 0x990   : > { %s3196_s16 = sshll.u32 %s4455_s21, 4  ;;  %s3197_s16 = int_to_ptr.vmem [resolvable:$true] %s3196_s16 }
 0x991   : > { %s4296_s23 = scalar_lea.vmem %s3197_s16, 128  ;;  %p4303_p7 = scmp.lt.s32.totalorder %s3197_s16, %s3197_s16 }
 0x992   : > { %p4297_p3 = scmp.ne.s32.totalorder %s3197_s16, %s4296_s23  ;;  %p4304_p9 = scmp.lt.s32.totalorder %s4296_s23, %s4296_s23 }
 0x994   : > { %p4298_p5 = pnand %p4297_p3, %p5441_p8  ;;  %p4305_p2 = por %p4304_p9, %p4303_p7 }
 0x996   : > { %p4299_p6 = pneg %p4298_p5 }
 0x998   : > { %p4306_p1 = pnand %p4305_p2, %p4299_p6 }
 0x99a   : > { %4309 = shalt.err (!%p4306_p1)
}
 0x99b   : > { %s5446_s25 = sld [smem:[#allocation59_spill]] }
 0x9a1   : > { %s5447_s27 = smov %s5446_s25  ;;  %s4310_s11 = scalar_lea.hbm %s5446_s25, 128 }
 0x9a2   : > { %p4311_p4 = scmp.ne.s32.totalorder %s5447_s27, %s4310_s11  ;;  %p4316_p10 = scmp.lt.u32.totalorder %s4310_s11, %s5447_s27 }
 0x9a4   : > { %p4312_p12 = pnand %p4311_p4, %p5441_p8 }
 0x9a6   : > { %p4313_p13 = pneg %p4312_p12 }
 0x9a8   : > { %p4318_p11 = pnand %p4316_p10, %p4313_p13 }
 0x9aa   : > { %4321 = shalt.err (!%p4318_p11)
}
 0x9ab   : > { %3774 = dma.vmem_to_hbm [thread:$0]  (%p5441_p8), %s3197_s16, 128, %s5447_s27, [#allocation27]   ;;  %v3127_v28 = vrot.slane %v5192_v31, 6  ;;  %v3131_v38 = vrot.slane %v5200_v16, 4  ;;  %v3135_v46 = vrot.slane %v5207_v58, 2 }
 0x9ac   : > { %s5448_s21 = sld [smem:[#allocation54_spill]]  ;;  %s4456_s16 = smov [#allocation25]  }
 0x9ad   : > { %s3183_s23 = sshll.u32 %s4456_s16, 4  ;;  %s3184_s23 = int_to_ptr.vmem [resolvable:$true] %s3183_s23 }
 0x9ae   : > { %s4322_s24 = scalar_lea.vmem %s3184_s23, 128  ;;  %p4329_p6 = scmp.lt.s32.totalorder %s3184_s23, %s3184_s23 }
 0x9af   : > { %p4323_p0 = scmp.ne.s32.totalorder %s3184_s23, %s4322_s24  ;;  %p4330_p7 = scmp.lt.s32.totalorder %s4322_s24, %s4322_s24 }
 0x9b1   : > { %p4324_p3 = pnand %p4323_p0, %p5441_p8  ;;  %p4331_p9 = por %p4330_p7, %p4329_p6 }
 0x9b2   : > { %v3451_v22 = vld [vmem:[%s5448_s21] ss:$0 sm:$0xff] }
 0x9b3   : > { %p4325_p5 = pneg %p4324_p3 }
 0x9b5   : > { %p4332_p2 = pnand %p4331_p9, %p4325_p5 }
 0xa25   : > { %v2441_v45 = vpop.f32.mrb[12].mxu0 }
 0xa26   : > { %v2442_v23 = vadd.f32 %v2441_v45, %v5179_v6  ;;  %v3648_v14 = vpop.f32.mrb[13].mxu0 }
 0xa28   : > { %v2452_v24 = vadd.f32 %v3451_v22, %v2442_v23 }
 0xa29   : > { %v2670_v25 = vpop.f32.mrb[14].mxu0 }
 0xa2a   : > { %3960 = vtanh.f32 %v2452_v24  ;;  %v3125_v26 = vrot.slane %v2670_v25, 7  ;;  %v3658_v27 = vpop.f32.mrb[15].mxu0 }
 0xa2c   : > { %v3126_v29 = vsel %vm1464_vm6, %v3125_v26, %v5185_v9 }
 0xa2d   : > { %v2814_v30 = vpop.f32.mrb[16].mxu0  ;;  %v3128_v32 = vsel %vm1466_vm7, %v3127_v28, %v3126_v29 }
 0xa2e   : > { %v3129_v34 = vrot.slane %v2814_v30, 5  ;;  %v3668_v35 = vpop.f32.mrb[17].mxu0 }
 0xa30   : > { %v3130_v33 = vsel %vm1468_vm8, %v3129_v34, %v3128_v32 }
 0xa31   : > { %v2958_v40 = vpop.f32.mrb[18].mxu0  ;;  %v3132_v41 = vsel %vm1470_vm9, %v3131_v38, %v3130_v33 }
 0xa32   : > { %v3133_v36 = vrot.slane %v2958_v40, 3  ;;  %v3678_v44 = vpop.f32.mrb[19].mxu0 }
 0xa34   : > { %v3961_v39 = vpop.eup %3960  ;;  %v3134_v47 = vsel %vm1472_vm10, %v3133_v36, %v3132_v41 }
 0xa35   : > { %3111 = vst.msk [vmem:[#allocation25] sm:$0xff] %vm998_vm5, %v3961_v39  ;;  %v3102_v48 = vpop.f32.mrb[20].mxu0  ;;  %v3136_v50 = vsel %vm1474_vm11, %v3135_v46, %v3134_v47 }
 0xa36   : > { %v3137_v20 = vrot.slane %v3102_v48, 1  ;;  %v3688_v51 = vpop.f32.mrb[21].mxu0 }
 0xa37   : > { %4335 = shalt.err (!%p4332_p2)
}
 0xa38   : > { %s5449_s11 = sld [smem:[#allocation58_spill]] }
 0xa3e   : > { %s4336_s1 = scalar_lea.hbm %s5449_s11, 128 }
 0xa3f   : > { %p4337_p1 = scmp.ne.s32.totalorder %s5449_s11, %s4336_s1  ;;  %p4342_p13 = scmp.lt.u32.totalorder %s4336_s1, %s5449_s11 }
 0xa41   : > { %p4338_p4 = pnand %p4337_p1, %p5441_p8 }
 0xa43   : > { %p4339_p12 = pneg %p4338_p4 }
 0xa45   : > { %p4344_p10 = pnand %p4342_p13, %p4339_p12 }
 0xa47   : > { %4347 = shalt.err (!%p4344_p10)
}
 0xa48   : > { %3772 = dma.vmem_to_hbm [thread:$0]  (%p5441_p8), %s3184_s23, 128, %s5449_s11, [#allocation24]   ;;  %v3138_v18 = vsel %vm1476_vm12, %v3137_v20, %v3136_v50 }
 0xa49   : > { %3140 = vst.msk [vmem:[#allocation2] sm:$0xff] %vm1072_vm4, %v3138_v18 }
 0xa4a   : > { %4397 = dma.done.wait (%p5441_p8), [#allocation24], 256  }
 0xa4b   : > { %4399 = vsyncadd (%p5441_p8), [#allocation24], 4294967040 }
 0xa4c   : > { %4401 = dma.done.wait (%p5441_p8), [#allocation27], 128  }
 0xa4d   : > { %4403 = vsyncadd (%p5441_p8), [#allocation27], 4294967168 }
 0xa4e PF: > { %s5450_s4 = sld [smem:[#allocation40_spill]]  ;;  %s5451_s21 = sld [smem:[#allocation37_spill]] }
 0xa4f   : > { %s5452_s16 = sld [smem:[#allocation44_spill]] }
 0xa54   : > { %p3843_p11 = scmp.ge.s32.totalorder %s5450_s4, 2  ;;  %s3220_s23 = sand.u32 1, %s5451_s21  }
 0xa55   : > { %p5453_p0 = scmp.ne.s32.totalorder %s5452_s16, 0  ;;  %s3221_s24 = scalar_lea.sflag [#allocation7], %s3220_s23 }
 0xa57   : > { %p3814_p3 = pnand %p3843_p11, %p5453_p0 }
 0xa59   : > { %4405 = dma.done.wait (!%p3814_p3), %s3221_s24, 128  }
 0xa5a   : > { %4407 = vsyncadd (!%p3814_p3), %s3221_s24, 4294967168  ;;  %s42_s25 = sadd.s32 1, %s5450_s4   ;;  %s5454_s10 = sld [smem:[#allocation38_spill]] }
 0xa5b   : > { %p39_p5 = scmp.ge.s32.totalorder %s42_s25, 10   ;;  %s5455_s23 = sld [smem:[#allocation45_spill]] }
 0xa5c   : > { %s5456_s24 = sld [smem:[#allocation39_spill]]  ;;  %s5457_s2 = sld [smem:[#allocation42_spill]] }
 0xa5d   : > { %s5458_s1 = smov %s4414_s22  ;;  %41 = sbr.rel (!%p39_p5) target bundleno = 27 (0x1b), region = 197 }
 0xa60   : > { %s5459_s22 = smov %s5454_s10 }
 0xa64   :  { %3226 = vsyncpa [#allocation6], 1 }
 0xa65   :  { %3228 = vsyncpa [#allocation6 + $0x1], 1 }
 0xa66   :  { %3229 = vsyncpa [#allocation9], 1 }
 0xa67   :  { %3230 = vsyncpa [#allocation12], 1 }
 0xa68   :  { %3231 = vsyncpa [#allocation15], 1 }
 0xa69   :  { %3232 = vsyncpa [#allocation18], 1 }
 0xa6a   :  { %3233 = vsyncpa [#allocation21], 1 }
 0xa6b   :  { %3234 = vsyncpa [#allocation7], 1 }
 0xa6c   :  { %3236 = vsyncpa [#allocation7 + $0x1], 1 }
 0xa6d   :  { %3237 = vsyncpa [#allocation24], 1 }
 0xa6e   :  { %3238 = vsyncpa [#allocation27], 1 }

</bundles_post_ra>
